<compile_context>
chip_gen: v7x
topology: tpu7x:2x2x1
jax: 0.10.0
libtpu: 0.0.40
codegen_flags: <defaults>
</compile_context>

<pallas_src>
import functools

import jax
import jax.numpy as jnp
from jax.experimental import pallas as pl
from jax.experimental.pallas import tpu as pltpu

BN_EPS = 1e-5
EXPANSION = 4

# Tile targets (clamped per call). K / N tiles are lane-dense multiples of 128.
TILE_M = 512
TILE_N = 256
TILE_K = 512

COMPUTE_DTYPE = jnp.bfloat16   # MXU inputs + intermediate activations
ACC_DTYPE = jnp.float32        # accumulation + epilogue math


def _round_up(x, m):
    return (x + m - 1) // m * m


def _choose_tile_m(m):
    """Row tile: multiple of 8, divides the padded M, >=2 blocks when possible
    (so the 'parallel' M axis can be sharded over both v7x TensorCores)."""
    mp8 = _round_up(m, 8)
    tm = min(TILE_M, mp8)
    if mp8 > 8 and _round_up(m, tm) // tm < 2:
        tm = _round_up((mp8 + 1) // 2, 8)
    return tm, _round_up(m, tm)


def _choose_tile_128(dim_p, tile_max):
    """Largest multiple of 128 <= tile_max that divides dim_p (dim_p % 128 == 0)."""
    best = 128
    t = 256
    while t <= min(tile_max, dim_p):
        if dim_p % t == 0:
            best = t
        t += 128
    return best


# ----------------------------------------------------------------------------
# Tiled matmul + bias (+ residual) (+ ReLU) kernel
# ----------------------------------------------------------------------------
def _matmul_kernel(*refs, apply_relu, has_res, use_scratch):
    if use_scratch:
        io, acc = refs[:-1], refs[-1]
    else:
        io, acc = refs, None
    if has_res:
        x_ref, w_ref, b_ref, res_ref, o_ref = io
    else:
        x_ref, w_ref, b_ref, o_ref = io
        res_ref = None
    if acc is None:           # f32 output: accumulate directly into o_ref
        acc = o_ref

    k = pl.program_id(2)

    @pl.when(k == 0)
    def _():
        acc[...] = jnp.zeros_like(acc)

    acc[...] += jnp.dot(x_ref[...], w_ref[...],
                        preferred_element_type=jnp.float32)

    @pl.when(k == pl.num_programs(2) - 1)
    def _():
        y = acc[...] + b_ref[...]
        if res_ref is not None:
            y = y + res_ref[...].astype(jnp.float32)
        if apply_relu:
            y = jnp.maximum(y, 0.0)
        o_ref[...] = y.astype(o_ref.dtype)


def matmul_fused(x, w_p, bias_p, res=None, apply_relu=True,
                 out_dtype=jnp.float32):
    """y = relu?(x @ w_p + bias [+ res]).

    x      : (M, Kp)  compute-dtype activation, channels already 128-padded.
    w_p    : (Kp, Np) compute-dtype, BN-folded, zero-padded weights.
    bias_p : (Np,)    f32 BN bias (padded with zeros).
    res    : (M, Np)  optional residual added before the ReLU.
    Returns (M, Np) in out_dtype (padded channels kept; caller slices at the end).
    """
    M, Kp = x.shape
    Kp2, Np = w_p.shape
    assert Kp == Kp2 and Kp % 128 == 0 and Np % 128 == 0

    tm, Mp = _choose_tile_m(M)
    tk = _choose_tile_128(Kp, TILE_K)
    tn = _choose_tile_128(Np, TILE_N)

    x_p = x if Mp == M else jnp.pad(x, ((0, Mp - M), (0, 0)))
    grid = (Mp // tm, Np // tn, Kp // tk)

    has_res = res is not None
    use_scratch = (out_dtype != jnp.float32)

    in_specs = [
        pl.BlockSpec((tm, tk), lambda i, j, k: (i, k)),
        pl.BlockSpec((tk, tn), lambda i, j, k: (k, j)),
        pl.BlockSpec((1, tn), lambda i, j, k: (0, j)),   # tiny, k-invariant
    ]
    args = [x_p, w_p, bias_p.reshape(1, Np)]
    if has_res:
        res_p = res if Mp == M else jnp.pad(res, ((0, Mp - M), (0, 0)))
        in_specs.append(pl.BlockSpec((tm, tn), lambda i, j, k: (i, j)))
        args.append(res_p)

    scratch = [pltpu.VMEM((tm, tn), jnp.float32)] if use_scratch else []

    kern = functools.partial(_matmul_kernel, apply_relu=apply_relu,
                             has_res=has_res, use_scratch=use_scratch)

    out = pl.pallas_call(
        kern,
        out_shape=jax.ShapeDtypeStruct((Mp, Np), out_dtype),
        grid_spec=pltpu.PrefetchScalarGridSpec(
            num_scalar_prefetch=0,
            grid=grid,
            in_specs=in_specs,
            out_specs=pl.BlockSpec((tm, tn), lambda i, j, k: (i, j)),
            scratch_shapes=scratch,
        ),
        compiler_params=pltpu.CompilerParams(
            dimension_semantics=("parallel", "parallel", "arbitrary"),
            vmem_limit_bytes=32 * 1024 * 1024,
        ),
    )(*args)
    return out[:M] if Mp != M else out


# ----------------------------------------------------------------------------
# One-time parameter preparation (BN fold + pad + bf16) — hoisted out of the
# per-forward hot path.
# ----------------------------------------------------------------------------
def fold_bn(bn):
    gamma, beta, mean, var = bn
    scale = gamma / jnp.sqrt(var + BN_EPS)
    return scale, beta - mean * scale


def prepare_params(params, in_planes):
    planes = params["bn1"][0].shape[0]
    cout = EXPANSION * planes
    kp_in = _round_up(in_planes, 128)
    np1 = _round_up(planes, 128)
    np3 = _round_up(cout, 128)

    s1, b1 = fold_bn(params["bn1"])
    w1 = params["w1"] * s1[None, :]
    prep = {
        "w1": jnp.pad(w1, ((0, kp_in - in_planes),
                           (0, np1 - planes))).astype(COMPUTE_DTYPE),
        "b1": b1.astype(jnp.float32),
    }

    s2, b2 = fold_bn(params["bn2"])
    w2 = params["w2"] * s2[None, None, None, :]
    w2 = jnp.pad(w2, ((0, 0), (0, 0),
                      (0, np1 - planes), (0, np1 - planes)))
    prep["w2"] = w2.reshape(9 * np1, np1).astype(COMPUTE_DTYPE)
    prep["b2"] = b2.astype(jnp.float32)

    s3, b3 = fold_bn(params["bn3"])
    w3 = params["w3"] * s3[None, :]
    prep["w3"] = jnp.pad(w3, ((0, np1 - planes),
                              (0, np3 - cout))).astype(COMPUTE_DTYPE)
    prep["b3"] = b3.astype(jnp.float32)

    if "w_sc" in params:
        ss, bs = fold_bn(params["bn_sc"])
        wsc = params["w_sc"] * ss[None, :]
        prep["w_sc"] = jnp.pad(wsc, ((0, kp_in - in_planes),
                                     (0, np3 - cout))).astype(COMPUTE_DTYPE)
        prep["b_sc"] = bs.astype(jnp.float32)
    return prep


# ----------------------------------------------------------------------------
# Bottleneck forward (Pallas) and pure-JAX reference
# ----------------------------------------------------------------------------
def bottleneck_forward(x_nchw, prep, stride=1):
    N, Cin, H, W = x_nchw.shape
    kp_in, np1 = prep["w1"].shape
    np3 = prep["w3"].shape[1]
    planes = prep["b1"].shape[0]
    cout = prep["b3"].shape[0]
    Ho = (H - 1) // stride + 1
    Wo = (W - 1) // stride + 1

    # TODO(synk): if the surrounding network were NHWC these transposes would
    # disappear; kept for NCHW module fidelity.
    x = jnp.transpose(x_nchw, (0, 2, 3, 1))               # NCHW -> NHWC (once)
    # bf16, channel-padded input; zero-padded channels propagate exactly.
    x_c = jnp.pad(x.astype(COMPUTE_DTYPE),
                  ((0, 0), (0, 0), (0, 0), (0, kp_in - Cin)))

    # ---- conv1 (1x1) + BN + ReLU ----
    b1_p = jnp.pad(prep["b1"], (0, np1 - planes))
    h = matmul_fused(x_c.reshape(N * H * W, kp_in), prep["w1"], b1_p,
                     apply_relu=True, out_dtype=COMPUTE_DTYPE)

    # ---- conv2 (3x3, stride) + BN + ReLU ----
    # bf16 im2col of the channel-padded activation -> one big-K MXU matmul.
    h = h.reshape(N, H, W, np1)
    hp = jnp.pad(h, ((0, 0), (1, 1), (1, 1), (0, 0)))
    cols = [hp[:, kh:kh + stride * (Ho - 1) + 1:stride,
               kw:kw + stride * (Wo - 1) + 1:stride, :]
            for kh in range(3) for kw in range(3)]
    patches = jnp.concatenate(cols, axis=-1).reshape(N * Ho * Wo, 9 * np1)
    b2_p = jnp.pad(prep["b2"], (0, np1 - planes))
    h = matmul_fused(patches, prep["w2"], b2_p,
                     apply_relu=True, out_dtype=COMPUTE_DTYPE)

    # ---- shortcut ----
    if "w_sc" in prep:
        xs = x_c[:, ::stride, ::stride, :].reshape(N * Ho * Wo, kp_in)
        b_sc_p = jnp.pad(prep["b_sc"], (0, np3 - cout))
        shortcut = matmul_fused(xs, prep["w_sc"], b_sc_p,
                                apply_relu=False, out_dtype=jnp.float32)
    else:
        # identity shortcut (stride == 1 and Cin == cout); keep f32 residual.
        shortcut = jnp.pad(x, ((0, 0), (0, 0), (0, 0), (0, np3 - Cin)))
        shortcut = shortcut.reshape(N * H * W, np3)

    # ---- conv3 (1x1) + BN, + residual, ReLU (fused epilogue) ----
    b3_p = jnp.pad(prep["b3"], (0, np3 - cout))
    out = matmul_fused(h, prep["w3"], b3_p, res=shortcut,
                       apply_relu=True, out_dtype=jnp.float32)
    out = out[:, :cout].reshape(N, Ho, Wo, cout)
    return jnp.transpose(out, (0, 3, 1, 2))


def reference_forward(x_nchw, params, stride=1):
    x = jnp.transpose(x_nchw, (0, 2, 3, 1))

    def conv(inp, w_hwio, s, pad):
        return jax.lax.conv_general_dilated(
            inp, w_hwio, window_strides=(s, s), padding=pad,
            dimension_numbers=("NHWC", "HWIO", "NHWC"))

    def bn(inp, p):
        g, b, m, v = p
        return (inp - m) / jnp.sqrt(v + BN_EPS) * g + b

    w1 = params["w1"].reshape(1, 1, *params["w1"].shape)
    w3 = params["w3"].reshape(1, 1, *params["w3"].shape)
    out = jax.nn.relu(bn(conv(x, w1, 1, [(0, 0), (0, 0)]), params["bn1"]))
    out = jax.nn.relu(bn(conv(out, params["w2"], stride, [(1, 1), (1, 1)]),
                         params["bn2"]))
    out = bn(conv(out, w3, 1, [(0, 0), (0, 0)]), params["bn3"])
    if "w_sc" in params:
        w_sc = params["w_sc"].reshape(1, 1, *params["w_sc"].shape)
        sc = bn(conv(x, w_sc, stride, [(0, 0), (0, 0)]), params["bn_sc"])
    else:
        sc = x
    out = jax.nn.relu(out + sc)
    return jnp.transpose(out, (0, 3, 1, 2))


def init_params(key, in_planes, planes, stride):
    keys = jax.random.split(key, 8)

    def bn_params(k, c):
        k1, k2, k3, k4 = jax.random.split(k, 4)
        gamma = 1.0 + 0.1 * jax.random.normal(k1, (c,), jnp.float32)
        beta = 0.1 * jax.random.normal(k2, (c,), jnp.float32)
        mean = 0.1 * jax.random.normal(k3, (c,), jnp.float32)
        var = 1.0 + 0.1 * jax.random.uniform(k4, (c,), jnp.float32)
        return (gamma, beta, mean, var)

    out_planes = EXPANSION * planes
    p = {
        "w1": 0.1 * jax.random.normal(keys[0], (in_planes, planes), jnp.float32),
        "bn1": bn_params(keys[1], planes),
        "w2": 0.1 * jax.random.normal(keys[2], (3, 3, planes, planes), jnp.float32),
        "bn2": bn_params(keys[3], planes),
        "w3": 0.1 * jax.random.normal(keys[4], (planes, out_planes), jnp.float32),
        "bn3": bn_params(keys[5], out_planes),
    }
    if stride != 1 or in_planes != out_planes:
        p["w_sc"] = 0.1 * jax.random.normal(keys[6], (in_planes, out_planes),
                                            jnp.float32)
        p["bn_sc"] = bn_params(keys[7], out_planes)
    return p


if __name__ == "__main__":
    key = jax.random.PRNGKey(0)

    configs = [
        # (N, in_planes, planes, H, W, stride)
        (2, 4, 4, 16, 16, 1),    # conv shortcut (channel expansion)
        (2, 8, 4, 15, 15, 2),    # strided conv shortcut, odd spatial size
        (2, 16, 4, 16, 16, 1),   # identity shortcut
    ]
    for idx, (N, in_planes, planes, H, W, stride) in enumerate(configs):
        kx, kp, key = jax.random.split(key, 3)
        x = jax.random.normal(kx, (N, in_planes, H, W), jnp.float32)
        params = init_params(kp, in_planes, planes, stride)

        prep = prepare_params(params, in_planes)            # hoisted, once
        fwd = jax.jit(functools.partial(bottleneck_forward, stride=stride))
        out = jax.block_until_ready(fwd(x, prep))

        ref = reference_forward(x, params, stride)

        Ho = (H - 1) // stride + 1
        Wo = (W - 1) // stride + 1
        assert out.shape == (N, EXPANSION * planes, Ho, Wo), out.shape
        max_err = float(jnp.max(jnp.abs(out - ref)))
        # bf16 MXU inputs (f32 accumulation) -> looser tolerance than f32.
        if not bool(jnp.allclose(out, ref, atol=3e-2, rtol=3e-2)):
            raise AssertionError(
                f"config {idx}: Pallas mismatch vs reference, max abs err = {max_err}")
    print("KERNEL_OK")
</pallas_src>

<mosaic_0001>
module attributes {stable_mosaic.version = 11 : i64} {
  func.func @_matmul_kernel(%arg0: i32, %arg1: i32, %arg2: i32, %arg3: memref<256x128xbf16, #tpu.memory_space<vmem>>, %arg4: memref<128x128xbf16, #tpu.memory_space<vmem>>, %arg5: memref<1x128xf32, #tpu.memory_space<vmem>>, %arg6: memref<256x128xbf16, #tpu.memory_space<vmem>>, %arg7: memref<256x128xf32, #tpu.memory_space<vmem>>) attributes {dimension_semantics = [#tpu.dimension_semantics<parallel>, #tpu.dimension_semantics<parallel>, #tpu.dimension_semantics<arbitrary>], iteration_bounds = array<i64: 2, 1, 1>, scalar_prefetch = 0 : i64, scratch_operands = 1 : i64, tpu.core_type = #tpu.core_type<tc>, window_params = [{transform_indices = @transform_0, window_bounds = array<i64: 256, 128>}, {transform_indices = @transform_1, window_bounds = array<i64: 128, 128>}, {transform_indices = @transform_2, window_bounds = array<i64: 1, 128>}, {transform_indices = @transform_3, window_bounds = array<i64: 256, 128>}]} {
    %c0_i32 = arith.constant 0 : i32
    %0 = arith.cmpi eq, %arg2, %c0_i32 : i32
    %1 = arith.extui %0 : i1 to i32
    %c0_i32_0 = arith.constant 0 : i32
    %2 = arith.cmpi ne, %1, %c0_i32_0 : i32
    scf.if %2 {
      %cst_10 = arith.constant 0.000000e+00 : f32
      %12 = vector.broadcast %cst_10 : f32 to vector<256x128xf32>
      %c0_11 = arith.constant 0 : index
      %c0_12 = arith.constant 0 : index
      %13 = vector.load %arg7[%c0_11, %c0_12] : memref<256x128xf32, #tpu.memory_space<vmem>>, vector<256x128xf32>
      tpu.vector_store %arg7[%c0_11, %c0_12], %12 {strides = array<i32>} : memref<256x128xf32, #tpu.memory_space<vmem>>, vector<256x128xf32>,
    } else {
    }
    %c0 = arith.constant 0 : index
    %c0_1 = arith.constant 0 : index
    %3 = vector.load %arg7[%c0, %c0_1] : memref<256x128xf32, #tpu.memory_space<vmem>>, vector<256x128xf32>
    %c0_2 = arith.constant 0 : index
    %c0_3 = arith.constant 0 : index
    %4 = vector.load %arg3[%c0_2, %c0_3] : memref<256x128xbf16, #tpu.memory_space<vmem>>, vector<256x128xbf16>
    %c0_4 = arith.constant 0 : index
    %c0_5 = arith.constant 0 : index
    %5 = vector.load %arg4[%c0_4, %c0_5] : memref<128x128xbf16, #tpu.memory_space<vmem>>, vector<128x128xbf16>
    %cst = arith.constant dense<0.000000e+00> : vector<256x128xf32>
    %6 = tpu.matmul %4, %5, %cst {dimension_numbers = #tpu.dot_dimension_numbers<[1], [0], [0], [1], [0, 0, 1, 1], [], []>} : vector<256x128xbf16>, vector<128x128xbf16>, vector<256x128xf32> -> vector<256x128xf32>
    %7 = arith.addf %3, %6 : vector<256x128xf32>
    %c0_6 = arith.constant 0 : index
    %c0_7 = arith.constant 0 : index
    %8 = vector.load %arg7[%c0_6, %c0_7] : memref<256x128xf32, #tpu.memory_space<vmem>>, vector<256x128xf32>
    tpu.vector_store %arg7[%c0_6, %c0_7], %7 {strides = array<i32>} : memref<256x128xf32, #tpu.memory_space<vmem>>, vector<256x128xf32>,
    %c0_i32_8 = arith.constant 0 : i32
    %9 = arith.cmpi eq, %arg2, %c0_i32_8 : i32
    %10 = arith.extui %9 : i1 to i32
    %c0_i32_9 = arith.constant 0 : i32
    %11 = arith.cmpi ne, %10, %c0_i32_9 : i32
    scf.if %11 {
      %c0_10 = arith.constant 0 : index
      %c0_11 = arith.constant 0 : index
      %12 = vector.load %arg7[%c0_10, %c0_11] : memref<256x128xf32, #tpu.memory_space<vmem>>, vector<256x128xf32>
      %c0_12 = arith.constant 0 : index
      %c0_13 = arith.constant 0 : index
      %13 = vector.load %arg5[%c0_12, %c0_13] : memref<1x128xf32, #tpu.memory_space<vmem>>, vector<1x128xf32>
      %14 = vector.broadcast %13 : vector<1x128xf32> to vector<256x128xf32>
      %15 = arith.addf %12, %14 : vector<256x128xf32>
      %cst_14 = arith.constant 0.000000e+00 : f32
      %16 = vector.broadcast %cst_14 : f32 to vector<256x128xf32>
      %17 = arith.maximumf %15, %16 : vector<256x128xf32>
      %18 = arith.truncf %17 : vector<256x128xf32> to vector<256x128xbf16>
      %c0_15 = arith.constant 0 : index
      %c0_16 = arith.constant 0 : index
      %19 = vector.load %arg6[%c0_15, %c0_16] : memref<256x128xbf16, #tpu.memory_space<vmem>>, vector<256x128xbf16>
      tpu.vector_store %arg6[%c0_15, %c0_16], %18 {strides = array<i32>} : memref<256x128xbf16, #tpu.memory_space<vmem>>, vector<256x128xbf16>,
    } else {
    }
    return
  }
  func.func @transform_0(%arg0: i32, %arg1: i32, %arg2: i32) -> (i32, i32) {
    %c0_i32 = arith.constant 0 : i32
    return %arg0, %arg2 : i32, i32
  }
  func.func @transform_1(%arg0: i32, %arg1: i32, %arg2: i32) -> (i32, i32) {
    %c0_i32 = arith.constant 0 : i32
    return %arg2, %arg1 : i32, i32
  }
  func.func @transform_2(%arg0: i32, %arg1: i32, %arg2: i32) -> (i32, i32) {
    %c0_i32 = arith.constant 0 : i32
    %c0_i32_0 = arith.constant 0 : i32
    return %c0_i32, %arg1 : i32, i32
  }
  func.func @transform_3(%arg0: i32, %arg1: i32, %arg2: i32) -> (i32, i32) {
    %c0_i32 = arith.constant 0 : i32
    return %arg0, %arg1 : i32, i32
  }
}

module attributes {stable_mosaic.version = 11 : i64} {
  func.func @_matmul_kernel(%arg0: i32, %arg1: i32, %arg2: i32, %arg3: memref<256x384xbf16, #tpu.memory_space<vmem>>, %arg4: memref<384x128xbf16, #tpu.memory_space<vmem>>, %arg5: memref<1x128xf32, #tpu.memory_space<vmem>>, %arg6: memref<256x128xbf16, #tpu.memory_space<vmem>>, %arg7: memref<256x128xf32, #tpu.memory_space<vmem>>) attributes {dimension_semantics = [#tpu.dimension_semantics<parallel>, #tpu.dimension_semantics<parallel>, #tpu.dimension_semantics<arbitrary>], iteration_bounds = array<i64: 2, 1, 3>, scalar_prefetch = 0 : i64, scratch_operands = 1 : i64, tpu.core_type = #tpu.core_type<tc>, window_params = [{transform_indices = @transform_0, window_bounds = array<i64: 256, 384>}, {transform_indices = @transform_1, window_bounds = array<i64: 384, 128>}, {transform_indices = @transform_2, window_bounds = array<i64: 1, 128>}, {transform_indices = @transform_3, window_bounds = array<i64: 256, 128>}]} {
    %c0_i32 = arith.constant 0 : i32
    %0 = arith.cmpi eq, %arg2, %c0_i32 : i32
    %1 = arith.extui %0 : i1 to i32
    %c0_i32_0 = arith.constant 0 : i32
    %2 = arith.cmpi ne, %1, %c0_i32_0 : i32
    scf.if %2 {
      %cst_9 = arith.constant 0.000000e+00 : f32
      %12 = vector.broadcast %cst_9 : f32 to vector<256x128xf32>
      %c0_10 = arith.constant 0 : index
      %c0_11 = arith.constant 0 : index
      %13 = vector.load %arg7[%c0_10, %c0_11] : memref<256x128xf32, #tpu.memory_space<vmem>>, vector<256x128xf32>
      tpu.vector_store %arg7[%c0_10, %c0_11], %12 {strides = array<i32>} : memref<256x128xf32, #tpu.memory_space<vmem>>, vector<256x128xf32>,
    } else {
    }
    %c0 = arith.constant 0 : index
    %c0_1 = arith.constant 0 : index
    %3 = vector.load %arg7[%c0, %c0_1] : memref<256x128xf32, #tpu.memory_space<vmem>>, vector<256x128xf32>
    %c0_2 = arith.constant 0 : index
    %c0_3 = arith.constant 0 : index
    %4 = vector.load %arg3[%c0_2, %c0_3] : memref<256x384xbf16, #tpu.memory_space<vmem>>, vector<256x384xbf16>
    %c0_4 = arith.constant 0 : index
    %c0_5 = arith.constant 0 : index
    %5 = vector.load %arg4[%c0_4, %c0_5] : memref<384x128xbf16, #tpu.memory_space<vmem>>, vector<384x128xbf16>
    %cst = arith.constant dense<0.000000e+00> : vector<256x128xf32>
    %6 = tpu.matmul %4, %5, %cst {dimension_numbers = #tpu.dot_dimension_numbers<[1], [0], [0], [1], [0, 0, 1, 1], [], []>} : vector<256x384xbf16>, vector<384x128xbf16>, vector<256x128xf32> -> vector<256x128xf32>
    %7 = arith.addf %3, %6 : vector<256x128xf32>
    %c0_6 = arith.constant 0 : index
    %c0_7 = arith.constant 0 : index
    %8 = vector.load %arg7[%c0_6, %c0_7] : memref<256x128xf32, #tpu.memory_space<vmem>>, vector<256x128xf32>
    tpu.vector_store %arg7[%c0_6, %c0_7], %7 {strides = array<i32>} : memref<256x128xf32, #tpu.memory_space<vmem>>, vector<256x128xf32>,
    %c2_i32 = arith.constant 2 : i32
    %9 = arith.cmpi eq, %arg2, %c2_i32 : i32
    %10 = arith.extui %9 : i1 to i32
    %c0_i32_8 = arith.constant 0 : i32
    %11 = arith.cmpi ne, %10, %c0_i32_8 : i32
    scf.if %11 {
      %c0_9 = arith.constant 0 : index
      %c0_10 = arith.constant 0 : index
      %12 = vector.load %arg7[%c0_9, %c0_10] : memref<256x128xf32, #tpu.memory_space<vmem>>, vector<256x128xf32>
      %c0_11 = arith.constant 0 : index
      %c0_12 = arith.constant 0 : index
      %13 = vector.load %arg5[%c0_11, %c0_12] : memref<1x128xf32, #tpu.memory_space<vmem>>, vector<1x128xf32>
      %14 = vector.broadcast %13 : vector<1x128xf32> to vector<256x128xf32>
      %15 = arith.addf %12, %14 : vector<256x128xf32>
      %cst_13 = arith.constant 0.000000e+00 : f32
      %16 = vector.broadcast %cst_13 : f32 to vector<256x128xf32>
      %17 = arith.maximumf %15, %16 : vector<256x128xf32>
      %18 = arith.truncf %17 : vector<256x128xf32> to vector<256x128xbf16>
      %c0_14 = arith.constant 0 : index
      %c0_15 = arith.constant 0 : index
      %19 = vector.load %arg6[%c0_14, %c0_15] : memref<256x128xbf16, #tpu.memory_space<vmem>>, vector<256x128xbf16>
      tpu.vector_store %arg6[%c0_14, %c0_15], %18 {strides = array<i32>} : memref<256x128xbf16, #tpu.memory_space<vmem>>, vector<256x128xbf16>,
    } else {
    }
    return
  }
  func.func @transform_0(%arg0: i32, %arg1: i32, %arg2: i32) -> (i32, i32) {
    %c0_i32 = arith.constant 0 : i32
    return %arg0, %arg2 : i32, i32
  }
  func.func @transform_1(%arg0: i32, %arg1: i32, %arg2: i32) -> (i32, i32) {
    %c0_i32 = arith.constant 0 : i32
    return %arg2, %arg1 : i32, i32
  }
  func.func @transform_2(%arg0: i32, %arg1: i32, %arg2: i32) -> (i32, i32) {
    %c0_i32 = arith.constant 0 : i32
    %c0_i32_0 = arith.constant 0 : i32
    return %c0_i32, %arg1 : i32, i32
  }
  func.func @transform_3(%arg0: i32, %arg1: i32, %arg2: i32) -> (i32, i32) {
    %c0_i32 = arith.constant 0 : i32
    return %arg0, %arg1 : i32, i32
  }
}

module attributes {stable_mosaic.version = 11 : i64} {
  func.func @_matmul_kernel(%arg0: i32, %arg1: i32, %arg2: i32, %arg3: memref<256x128xbf16, #tpu.memory_space<vmem>>, %arg4: memref<128x128xbf16, #tpu.memory_space<vmem>>, %arg5: memref<1x128xf32, #tpu.memory_space<vmem>>, %arg6: memref<256x128xf32, #tpu.memory_space<vmem>>) attributes {dimension_semantics = [#tpu.dimension_semantics<parallel>, #tpu.dimension_semantics<parallel>, #tpu.dimension_semantics<arbitrary>], iteration_bounds = array<i64: 2, 1, 1>, scalar_prefetch = 0 : i64, scratch_operands = 0 : i64, tpu.core_type = #tpu.core_type<tc>, window_params = [{transform_indices = @transform_0, window_bounds = array<i64: 256, 128>}, {transform_indices = @transform_1, window_bounds = array<i64: 128, 128>}, {transform_indices = @transform_2, window_bounds = array<i64: 1, 128>}, {transform_indices = @transform_3, window_bounds = array<i64: 256, 128>}]} {
    %c0_i32 = arith.constant 0 : i32
    %0 = arith.cmpi eq, %arg2, %c0_i32 : i32
    %1 = arith.extui %0 : i1 to i32
    %c0_i32_0 = arith.constant 0 : i32
    %2 = arith.cmpi ne, %1, %c0_i32_0 : i32
    scf.if %2 {
      %cst_10 = arith.constant 0.000000e+00 : f32
      %12 = vector.broadcast %cst_10 : f32 to vector<256x128xf32>
      %c0_11 = arith.constant 0 : index
      %c0_12 = arith.constant 0 : index
      %13 = vector.load %arg6[%c0_11, %c0_12] : memref<256x128xf32, #tpu.memory_space<vmem>>, vector<256x128xf32>
      tpu.vector_store %arg6[%c0_11, %c0_12], %12 {strides = array<i32>} : memref<256x128xf32, #tpu.memory_space<vmem>>, vector<256x128xf32>,
    } else {
    }
    %c0 = arith.constant 0 : index
    %c0_1 = arith.constant 0 : index
    %3 = vector.load %arg6[%c0, %c0_1] : memref<256x128xf32, #tpu.memory_space<vmem>>, vector<256x128xf32>
    %c0_2 = arith.constant 0 : index
    %c0_3 = arith.constant 0 : index
    %4 = vector.load %arg3[%c0_2, %c0_3] : memref<256x128xbf16, #tpu.memory_space<vmem>>, vector<256x128xbf16>
    %c0_4 = arith.constant 0 : index
    %c0_5 = arith.constant 0 : index
    %5 = vector.load %arg4[%c0_4, %c0_5] : memref<128x128xbf16, #tpu.memory_space<vmem>>, vector<128x128xbf16>
    %cst = arith.constant dense<0.000000e+00> : vector<256x128xf32>
    %6 = tpu.matmul %4, %5, %cst {dimension_numbers = #tpu.dot_dimension_numbers<[1], [0], [0], [1], [0, 0, 1, 1], [], []>} : vector<256x128xbf16>, vector<128x128xbf16>, vector<256x128xf32> -> vector<256x128xf32>
    %7 = arith.addf %3, %6 : vector<256x128xf32>
    %c0_6 = arith.constant 0 : index
    %c0_7 = arith.constant 0 : index
    %8 = vector.load %arg6[%c0_6, %c0_7] : memref<256x128xf32, #tpu.memory_space<vmem>>, vector<256x128xf32>
    tpu.vector_store %arg6[%c0_6, %c0_7], %7 {strides = array<i32>} : memref<256x128xf32, #tpu.memory_space<vmem>>, vector<256x128xf32>,
    %c0_i32_8 = arith.constant 0 : i32
    %9 = arith.cmpi eq, %arg2, %c0_i32_8 : i32
    %10 = arith.extui %9 : i1 to i32
    %c0_i32_9 = arith.constant 0 : i32
    %11 = arith.cmpi ne, %10, %c0_i32_9 : i32
    scf.if %11 {
      %c0_10 = arith.constant 0 : index
      %c0_11 = arith.constant 0 : index
      %12 = vector.load %arg6[%c0_10, %c0_11] : memref<256x128xf32, #tpu.memory_space<vmem>>, vector<256x128xf32>
      %c0_12 = arith.constant 0 : index
      %c0_13 = arith.constant 0 : index
      %13 = vector.load %arg5[%c0_12, %c0_13] : memref<1x128xf32, #tpu.memory_space<vmem>>, vector<1x128xf32>
      %14 = vector.broadcast %13 : vector<1x128xf32> to vector<256x128xf32>
      %15 = arith.addf %12, %14 : vector<256x128xf32>
      %c0_14 = arith.constant 0 : index
      %c0_15 = arith.constant 0 : index
      %16 = vector.load %arg6[%c0_14, %c0_15] : memref<256x128xf32, #tpu.memory_space<vmem>>, vector<256x128xf32>
      tpu.vector_store %arg6[%c0_14, %c0_15], %15 {strides = array<i32>} : memref<256x128xf32, #tpu.memory_space<vmem>>, vector<256x128xf32>,
    } else {
    }
    return
  }
  func.func @transform_0(%arg0: i32, %arg1: i32, %arg2: i32) -> (i32, i32) {
    %c0_i32 = arith.constant 0 : i32
    return %arg0, %arg2 : i32, i32
  }
  func.func @transform_1(%arg0: i32, %arg1: i32, %arg2: i32) -> (i32, i32) {
    %c0_i32 = arith.constant 0 : i32
    return %arg2, %arg1 : i32, i32
  }
  func.func @transform_2(%arg0: i32, %arg1: i32, %arg2: i32) -> (i32, i32) {
    %c0_i32 = arith.constant 0 : i32
    %c0_i32_0 = arith.constant 0 : i32
    return %c0_i32, %arg1 : i32, i32
  }
  func.func @transform_3(%arg0: i32, %arg1: i32, %arg2: i32) -> (i32, i32) {
    %c0_i32 = arith.constant 0 : i32
    return %arg0, %arg1 : i32, i32
  }
}

module attributes {stable_mosaic.version = 11 : i64} {
  func.func @_matmul_kernel(%arg0: i32, %arg1: i32, %arg2: i32, %arg3: memref<256x128xbf16, #tpu.memory_space<vmem>>, %arg4: memref<128x128xbf16, #tpu.memory_space<vmem>>, %arg5: memref<1x128xf32, #tpu.memory_space<vmem>>, %arg6: memref<256x128xf32, #tpu.memory_space<vmem>>, %arg7: memref<256x128xf32, #tpu.memory_space<vmem>>) attributes {dimension_semantics = [#tpu.dimension_semantics<parallel>, #tpu.dimension_semantics<parallel>, #tpu.dimension_semantics<arbitrary>], iteration_bounds = array<i64: 2, 1, 1>, scalar_prefetch = 0 : i64, scratch_operands = 0 : i64, tpu.core_type = #tpu.core_type<tc>, window_params = [{transform_indices = @transform_0, window_bounds = array<i64: 256, 128>}, {transform_indices = @transform_1, window_bounds = array<i64: 128, 128>}, {transform_indices = @transform_2, window_bounds = array<i64: 1, 128>}, {transform_indices = @transform_3, window_bounds = array<i64: 256, 128>}, {transform_indices = @transform_4, window_bounds = array<i64: 256, 128>}]} {
    %c0_i32 = arith.constant 0 : i32
    %0 = arith.cmpi eq, %arg2, %c0_i32 : i32
    %1 = arith.extui %0 : i1 to i32
    %c0_i32_0 = arith.constant 0 : i32
    %2 = arith.cmpi ne, %1, %c0_i32_0 : i32
    scf.if %2 {
      %cst_10 = arith.constant 0.000000e+00 : f32
      %12 = vector.broadcast %cst_10 : f32 to vector<256x128xf32>
      %c0_11 = arith.constant 0 : index
      %c0_12 = arith.constant 0 : index
      %13 = vector.load %arg7[%c0_11, %c0_12] : memref<256x128xf32, #tpu.memory_space<vmem>>, vector<256x128xf32>
      tpu.vector_store %arg7[%c0_11, %c0_12], %12 {strides = array<i32>} : memref<256x128xf32, #tpu.memory_space<vmem>>, vector<256x128xf32>,
    } else {
    }
    %c0 = arith.constant 0 : index
    %c0_1 = arith.constant 0 : index
    %3 = vector.load %arg7[%c0, %c0_1] : memref<256x128xf32, #tpu.memory_space<vmem>>, vector<256x128xf32>
    %c0_2 = arith.constant 0 : index
    %c0_3 = arith.constant 0 : index
    %4 = vector.load %arg3[%c0_2, %c0_3] : memref<256x128xbf16, #tpu.memory_space<vmem>>, vector<256x128xbf16>
    %c0_4 = arith.constant 0 : index
    %c0_5 = arith.constant 0 : index
    %5 = vector.load %arg4[%c0_4, %c0_5] : memref<128x128xbf16, #tpu.memory_space<vmem>>, vector<128x128xbf16>
    %cst = arith.constant dense<0.000000e+00> : vector<256x128xf32>
    %6 = tpu.matmul %4, %5, %cst {dimension_numbers = #tpu.dot_dimension_numbers<[1], [0], [0], [1], [0, 0, 1, 1], [], []>} : vector<256x128xbf16>, vector<128x128xbf16>, vector<256x128xf32> -> vector<256x128xf32>
    %7 = arith.addf %3, %6 : vector<256x128xf32>
    %c0_6 = arith.constant 0 : index
    %c0_7 = arith.constant 0 : index
    %8 = vector.load %arg7[%c0_6, %c0_7] : memref<256x128xf32, #tpu.memory_space<vmem>>, vector<256x128xf32>
    tpu.vector_store %arg7[%c0_6, %c0_7], %7 {strides = array<i32>} : memref<256x128xf32, #tpu.memory_space<vmem>>, vector<256x128xf32>,
    %c0_i32_8 = arith.constant 0 : i32
    %9 = arith.cmpi eq, %arg2, %c0_i32_8 : i32
    %10 = arith.extui %9 : i1 to i32
    %c0_i32_9 = arith.constant 0 : i32
    %11 = arith.cmpi ne, %10, %c0_i32_9 : i32
    scf.if %11 {
      %c0_10 = arith.constant 0 : index
      %c0_11 = arith.constant 0 : index
      %12 = vector.load %arg7[%c0_10, %c0_11] : memref<256x128xf32, #tpu.memory_space<vmem>>, vector<256x128xf32>
      %c0_12 = arith.constant 0 : index
      %c0_13 = arith.constant 0 : index
      %13 = vector.load %arg5[%c0_12, %c0_13] : memref<1x128xf32, #tpu.memory_space<vmem>>, vector<1x128xf32>
      %14 = vector.broadcast %13 : vector<1x128xf32> to vector<256x128xf32>
      %15 = arith.addf %12, %14 : vector<256x128xf32>
      %c0_14 = arith.constant 0 : index
      %c0_15 = arith.constant 0 : index
      %16 = vector.load %arg6[%c0_14, %c0_15] : memref<256x128xf32, #tpu.memory_space<vmem>>, vector<256x128xf32>
      %17 = arith.addf %15, %16 : vector<256x128xf32>
      %cst_16 = arith.constant 0.000000e+00 : f32
      %18 = vector.broadcast %cst_16 : f32 to vector<256x128xf32>
      %19 = arith.maximumf %17, %18 : vector<256x128xf32>
      %c0_17 = arith.constant 0 : index
      %c0_18 = arith.constant 0 : index
      %20 = vector.load %arg7[%c0_17, %c0_18] : memref<256x128xf32, #tpu.memory_space<vmem>>, vector<256x128xf32>
      tpu.vector_store %arg7[%c0_17, %c0_18], %19 {strides = array<i32>} : memref<256x128xf32, #tpu.memory_space<vmem>>, vector<256x128xf32>,
    } else {
    }
    return
  }
  func.func @transform_0(%arg0: i32, %arg1: i32, %arg2: i32) -> (i32, i32) {
    %c0_i32 = arith.constant 0 : i32
    return %arg0, %arg2 : i32, i32
  }
  func.func @transform_1(%arg0: i32, %arg1: i32, %arg2: i32) -> (i32, i32) {
    %c0_i32 = arith.constant 0 : i32
    return %arg2, %arg1 : i32, i32
  }
  func.func @transform_2(%arg0: i32, %arg1: i32, %arg2: i32) -> (i32, i32) {
    %c0_i32 = arith.constant 0 : i32
    %c0_i32_0 = arith.constant 0 : i32
    return %c0_i32, %arg1 : i32, i32
  }
  func.func @transform_3(%arg0: i32, %arg1: i32, %arg2: i32) -> (i32, i32) {
    %c0_i32 = arith.constant 0 : i32
    return %arg0, %arg1 : i32, i32
  }
  func.func @transform_4(%arg0: i32, %arg1: i32, %arg2: i32) -> (i32, i32) {
    %c0_i32 = arith.constant 0 : i32
    return %arg0, %arg1 : i32, i32
  }
}

</mosaic_0001>

<bundles_post_ra>
// kernel: bottleneck_forward.4
= control target key start
LH: loop header
LB: loop body
LE: loop exit
PB: predicated region body
PF: predicated region fallthrough
CT: control target
= control target key end

     0   :  { %8 = vsyncpa [#allocation4], 0  ;;  %s1540_s12 = smov 0   ;;  %s1542_s13 = smov 0   ;;  %s1695_s0 = inlined_call_operand.vmem [shape: bf16[512,128], index: 0, kind: input, shape index: {}]   ;;  %s1696_s1 = inlined_call_operand.hbm [shape: bf16[128,128], index: 1, kind: input, shape index: {}]   ;;  %s1697_s2 = inlined_call_operand.vmem [shape: f32[1,128], index: 2, kind: input, shape index: {}]   ;;  %s1698_s3 = inlined_call_operand.vmem [shape: bf16[512,128], index: 3, kind: output, shape index: {}]  }
   0x1   :  { %s1544_s14 = smov 0  }
   0x2 LB: > { %s1114_s15 = sadd.s32 4294967295, %s1515_s14   ;;  %s33_s16 = sadd.s32 1, %s1511_s13  ;;  %s1515_s14 = sphi %s1544_s14, %s14_s14   ;;  %s1511_s13 = sphi %s1542_s13, %s1708_s13   ;;  %s1507_s12 = sphi %s1540_s12, %s1707_s12  }
   0x3   : > { %p35_p0 = scmp.ge.s32.totalorder %s33_s16, 2  ;;  %p1116_p1 = scmp.ge.s32.totalorder %s1515_s14, 1 }
   0x4   : > { %p148_p2 = scmp.lt.s32.totalorder %s1515_s14, 3  ;;  %p1565_p4 = scmp.eq.s32.totalorder %s1114_s15, 0 }
   0x5   : > { %s1710_s16 = smov (%p35_p0, %s33_s16), 0  ;;  %s1517_s19 = smov [#allocation3]  }
   0x6   : > { %p1561_p3 = pnand %p1116_p1, %p148_p2  ;;  %s164_s20 = sshll.u32 %s1517_s19, 4  ;;  %s165_s20 = int_to_ptr.vmem [resolvable:$true] %s164_s20 }
   0x7   : > { %s1703_s18 = scalar_select %p1565_p4, 1, 0 }
   0x8   : > { %s1702_s17 = scalar_select %p1561_p3, 1, 0 }
   0x9   : > { %p1404_p5 = pneg %p1561_p3  ;;  %s1461_s24 = scalar_lea.hbm %s1696_s1, 1024 }
   0xa   : > { %p1462_p7 = scmp.ne.s32.totalorder %s1696_s1, %s1461_s24  ;;  %p1468_p11 = scmp.lt.u32.totalorder %s1461_s24, %s1696_s1 }
   0xb   : > { %p1573_p6 = pnand %p1565_p4, %p1404_p5 }
   0xd   : > { %p1463_p8 = pneg %p1573_p6 }
   0xf   : > { %p1464_p9 = pnand %p1463_p8, %p1462_p7 }
  0x11   : > { %p1465_p10 = pneg %p1464_p9 }
  0x13   : > { %p1470_p12 = pnand %p1468_p11, %p1465_p10 }
  0x15   : > { %1473 = shalt.err (!%p1470_p12)
}
  0x16   : > { %s1474_s29 = scalar_lea.vmem %s165_s20, 1024  ;;  %p1482_p2 = scmp.lt.s32.totalorder %s165_s20, %s165_s20 }
  0x17   : > { %p1475_p13 = scmp.ne.s32.totalorder %s165_s20, %s1474_s29  ;;  %p1483_p5 = scmp.lt.s32.totalorder %s1474_s29, %s1474_s29 }
  0x19   : > { %p1477_p0 = pnand %p1475_p13, %p1463_p8  ;;  %p1484_p4 = por %p1483_p5, %p1482_p2 }
  0x1b   : > { %p1478_p1 = pneg %p1477_p0 }
  0x1d   : > { %p1485_p3 = pnand %p1484_p4, %p1478_p1 }
  0x1f   : > { %1488 = shalt.err (!%p1485_p3)
}
  0x20   : > { %s1518_s30 = smov 64   ;;  %s1519_s4 = smov 4  }
  0x21   : > { %1407 = dma.hbm_to_vmem [thread:$0]  (!%p1573_p6), %s1696_s1, 1024, %s165_s20, [#allocation4], %s1518_s30, %s1518_s30, %s1519_s4  }
  0x22   : > { %p1705_p7 = scmp.ne.s32.totalorder %s1702_s17, 0 }
  0x23   : > { %p1706_p9 = scmp.ne.s32.totalorder (!%p1705_p7), %s1703_s18, 0 }
  0x24   : > { %198 = sbr.rel (%p1705_p7) target bundleno = 323 (0x143), region = 32 }
  0x2b   : > { %1502 = dma.done.wait (%p1706_p9), [#allocation4], 1024  }
  0x2c   : > { %1504 = vsyncadd (%p1706_p9), [#allocation4], 4294966272  ;;  %s1122_s7 = sshll.u32 %s1507_s12, 5  ;;  %v1437_v0 = vld [vmem:[#allocation3] sm:$0xff]   ;;  %v1438_v1 = vld [vmem:[#allocation3 + $0x8] sm:$0xff]  }
  0x2d   : > { %p232_p3 = scmp.lt.s32.totalorder %s1122_s7, 63  ;;  %1336 = vmatprep.subr.bf16.mxu0 %v1437_v0  ;;  %1384 = vmatprep.subr.bf16.mxu1 %v1437_v0  ;;  %v1439_v2 = vld [vmem:[#allocation3 + $0x10] sm:$0xff]   ;;  %v1440_v3 = vld [vmem:[#allocation3 + $0x18] sm:$0xff]   ;;  %v1441_v6 = vld [vmem:[#allocation3 + $0x20] sm:$0xff]  }
  0x2e   : > { %1337 = vmatpush3.bf16.msra.mxu0 %v1437_v0  ;;  %1392 = vmatpush3.bf16.msra.mxu1 %v1437_v0  ;;  %v1442_v7 = vld [vmem:[#allocation3 + $0x28] sm:$0xff]   ;;  %v1443_v8 = vld [vmem:[#allocation3 + $0x30] sm:$0xff]   ;;  %v1444_v9 = vld [vmem:[#allocation3 + $0x38] sm:$0xff]  }
  0x2f   : > { %s1712_s7 = smov (!%p232_p3, %s1122_s7), 63  ;;  %1338 = vmatprep.subr.bf16.mxu0 %v1438_v1  ;;  %1385 = vmatprep.subr.bf16.mxu1 %v1438_v1  ;;  %v1629_v24 = vld [vmem:[%s1697_s2] ss:$0 sm:$0xff] }
  0x30   : > { %s1123_s8 = sshll.u32 %s1712_s7, 2 }
  0x31   : > { %s1608_s11 = scalar_lea.vmem %s1695_s0, %s1123_s8  ;;  %s1644_s19 = scalar_lea.vmem %s1698_s3, %s1123_s8 }
  0x32   : > { %1339 = vmatpush3.bf16.msra.mxu0 %v1438_v1  ;;  %1393 = vmatpush3.bf16.msra.mxu1 %v1438_v1  ;;  %v1445_v4 = vld [vmem:[%s1608_s11] sm:$0xff]   ;;  %v1447_v10 = vld [vmem:[%s1608_s11 + $0x8] sm:$0xff]   ;;  %v1449_v12 = vld [vmem:[%s1608_s11 + $0x10] sm:$0xff]  }
  0x33   : > { %1340 = vmatprep.subr.bf16.mxu0 %v1439_v2  ;;  %1386 = vmatprep.subr.bf16.mxu1 %v1439_v2  ;;  %v1446_v5 = vld [vmem:[%s1608_s11 + $0x40] sm:$0xff]   ;;  %v1448_v11 = vld [vmem:[%s1608_s11 + $0x48] sm:$0xff]   ;;  %v1450_v13 = vld [vmem:[%s1608_s11 + $0x50] sm:$0xff]  }
  0x34   : > { %1352 = vmatprep.mubr.bf16.mxu0 %v1445_v4  ;;  %1368 = vmatprep.mubr.bf16.mxu1 %v1446_v5  ;;  %v1451_v14 = vld [vmem:[%s1608_s11 + $0x18] sm:$0xff]   ;;  %v1453_v16 = vld [vmem:[%s1608_s11 + $0x20] sm:$0xff]   ;;  %v1455_v18 = vld [vmem:[%s1608_s11 + $0x28] sm:$0xff]  }
  0x35   : > { %v1452_v15 = vld [vmem:[%s1608_s11 + $0x58] sm:$0xff]   ;;  %v1454_v17 = vld [vmem:[%s1608_s11 + $0x60] sm:$0xff]   ;;  %v1456_v19 = vld [vmem:[%s1608_s11 + $0x68] sm:$0xff]  }
  0x36   : > { %1341 = vmatpush3.bf16.msra.mxu0 %v1439_v2  ;;  %1394 = vmatpush3.bf16.msra.mxu1 %v1439_v2  ;;  %v1457_v20 = vld [vmem:[%s1608_s11 + $0x30] sm:$0xff]   ;;  %v1459_v22 = vld [vmem:[%s1608_s11 + $0x38] sm:$0xff]  }
  0x37   : > { %1342 = vmatprep.subr.bf16.mxu0 %v1440_v3  ;;  %1387 = vmatprep.subr.bf16.mxu1 %v1440_v3  ;;  %v1458_v21 = vld [vmem:[%s1608_s11 + $0x70] sm:$0xff]   ;;  %v1460_v23 = vld [vmem:[%s1608_s11 + $0x78] sm:$0xff]  }
  0x3a   : > { %1343 = vmatpush3.bf16.msra.mxu0 %v1440_v3  ;;  %1395 = vmatpush3.bf16.msra.mxu1 %v1440_v3 }
  0x3b   : > { %1344 = vmatprep.subr.bf16.mxu0 %v1441_v6  ;;  %1388 = vmatprep.subr.bf16.mxu1 %v1441_v6 }
  0x3e   : > { %1345 = vmatpush3.bf16.msra.mxu0 %v1441_v6  ;;  %1396 = vmatpush3.bf16.msra.mxu1 %v1441_v6 }
  0x3f   : > { %1346 = vmatprep.subr.bf16.mxu0 %v1442_v7  ;;  %1389 = vmatprep.subr.bf16.mxu1 %v1442_v7 }
  0x42   : > { %1347 = vmatpush3.bf16.msra.mxu0 %v1442_v7  ;;  %1397 = vmatpush3.bf16.msra.mxu1 %v1442_v7 }
  0x43   : > { %1348 = vmatprep.subr.bf16.mxu0 %v1443_v8  ;;  %1390 = vmatprep.subr.bf16.mxu1 %v1443_v8 }
  0x46   : > { %1349 = vmatpush3.bf16.msra.mxu0 %v1443_v8  ;;  %1398 = vmatpush3.bf16.msra.mxu1 %v1443_v8 }
  0x47   : > { %1350 = vmatprep.subr.bf16.mxu0 %v1444_v9  ;;  %1391 = vmatprep.subr.bf16.mxu1 %v1444_v9 }
  0x4a   : > { %1351 = vmatpush3.bf16.msra.mxu0 %v1444_v9  ;;  %1399 = vmatpush3.bf16.msra.mxu1 %v1444_v9 }
  0x4d   : > { %1353 = vmatmul.mubr.bf16.vlgmr.msra.gmra.mrb[0].mxu0 %v1447_v10  ;;  %1369 = vmatmul.mubr.bf16.vlgmr.msra.gmra.mrb[0].mxu1 %v1448_v11 }
  0x4e   : > { %1356 = vmatprep.mubr.bf16.mxu0 %v1449_v12  ;;  %1372 = vmatprep.mubr.bf16.mxu1 %v1450_v13 }
  0x55   : > { %1357 = vmatmul.mubr.bf16.gmra.mrb[4].mxu0 %v1451_v14  ;;  %1373 = vmatmul.mubr.bf16.gmra.mrb[4].mxu1 %v1452_v15 }
  0x56   : > { %1360 = vmatprep.mubr.bf16.mxu0 %v1453_v16  ;;  %1376 = vmatprep.mubr.bf16.mxu1 %v1454_v17 }
  0x5d   : > { %1361 = vmatmul.mubr.bf16.gmra.mrb[8].mxu0 %v1455_v18  ;;  %1377 = vmatmul.mubr.bf16.gmra.mrb[8].mxu1 %v1456_v19 }
  0x5e   : > { %1364 = vmatprep.mubr.bf16.mxu0 %v1457_v20  ;;  %1380 = vmatprep.mubr.bf16.mxu1 %v1458_v21 }
  0x65   : > { %1365 = vmatmul.mubr.bf16.gmra.mrb[12].mxu0 %v1459_v22  ;;  %1381 = vmatmul.mubr.bf16.gmra.mrb[12].mxu1 %v1460_v23 }
 0x120   : > { %v1354_v25 = vpop.f32.mrb[0].mxu0  ;;  %v1370_v26 = vpop.f32.mrb[0].mxu1 }
 0x121   : > { %v783_v27 = vadd.f32 %v1354_v25, %v1629_v24  ;;  %v799_v28 = vadd.f32 %v1370_v26, %v1629_v24  ;;  %v548_v29 = vpop.f32.mrb[1].mxu0  ;;  %v612_v30 = vpop.f32.mrb[1].mxu1 }
 0x122   : > { %v781_v31 = vadd.f32 %v1629_v24, %v548_v29  ;;  %v797_v32 = vadd.f32 %v1629_v24, %v612_v30  ;;  %v1355_v33 = vpop.f32.mrb[2].mxu0  ;;  %v1371_v34 = vpop.f32.mrb[2].mxu1 }
 0x123   : > { %v784_v35 = vadd.f32 %v1355_v33, %v1629_v24  ;;  %v800_v36 = vadd.f32 %v1371_v34, %v1629_v24  ;;  %v551_v37 = vpop.f32.mrb[3].mxu0  ;;  %v615_v38 = vpop.f32.mrb[3].mxu1  ;;  %v815_v41 = vmax.f32 %v783_v27, 0.0  ;;  %v831_v42 = vmax.f32 %v799_v28, 0.0 }
 0x124   : > { %v782_v39 = vadd.f32 %v1629_v24, %v551_v37  ;;  %v798_v40 = vadd.f32 %v1629_v24, %v615_v38  ;;  %v813_v45 = vmax.f32 %v781_v31, 0.0  ;;  %v829_v46 = vmax.f32 %v797_v32, 0.0 }
 0x125   : > { %v816_v43 = vmax.f32 %v784_v35, 0.0  ;;  %v832_v44 = vmax.f32 %v800_v36, 0.0 }
 0x126   : > { %v814_v47 = vmax.f32 %v782_v39, 0.0  ;;  %v830_v48 = vmax.f32 %v798_v40, 0.0 }
 0x127   : > { %v1225_v49 = vpack.c.bf16 %v816_v43, %v815_v41  ;;  %v1265_v50 = vpack.c.bf16 %v832_v44, %v831_v42 }
 0x128   : > { %v1220_v51 = vpack.c.bf16 %v814_v47, %v813_v45  ;;  %v1260_v52 = vpack.c.bf16 %v830_v48, %v829_v46  ;;  %v1358_v53 = vpop.f32.mrb[4].mxu0  ;;  %v1374_v54 = vpop.f32.mrb[4].mxu1 }
 0x129   : > { %1297 = vst [vmem:[%s1644_s19 + $0x8] sm:$0xff] %v1225_v49   ;;  %1305 = vst [vmem:[%s1644_s19 + $0x48] sm:$0xff] %v1265_v50   ;;  %v787_v55 = vadd.f32 %v1358_v53, %v1629_v24  ;;  %v803_v56 = vadd.f32 %v1374_v54, %v1629_v24  ;;  %v564_v57 = vpop.f32.mrb[5].mxu0  ;;  %v628_v58 = vpop.f32.mrb[5].mxu1 }
 0x12a   : > { %1221 = vst [vmem:[%s1644_s19] sm:$0xff] %v1220_v51   ;;  %1304 = vst [vmem:[%s1644_s19 + $0x40] sm:$0xff] %v1260_v52   ;;  %v785_v59 = vadd.f32 %v1629_v24, %v564_v57  ;;  %v801_v60 = vadd.f32 %v1629_v24, %v628_v58  ;;  %v1359_v61 = vpop.f32.mrb[6].mxu0  ;;  %v1375_v62 = vpop.f32.mrb[6].mxu1 }
 0x12b   : > { %v788_v63 = vadd.f32 %v1359_v61, %v1629_v24  ;;  %v804_v0 = vadd.f32 %v1375_v62, %v1629_v24  ;;  %v567_v1 = vpop.f32.mrb[7].mxu0  ;;  %v631_v2 = vpop.f32.mrb[7].mxu1  ;;  %v819_v5 = vmax.f32 %v787_v55, 0.0  ;;  %v835_v6 = vmax.f32 %v803_v56, 0.0 }
 0x12c   : > { %v786_v3 = vadd.f32 %v1629_v24, %v567_v1  ;;  %v802_v4 = vadd.f32 %v1629_v24, %v631_v2  ;;  %v817_v9 = vmax.f32 %v785_v59, 0.0  ;;  %v833_v10 = vmax.f32 %v801_v60, 0.0 }
 0x12d   : > { %v820_v7 = vmax.f32 %v788_v63, 0.0  ;;  %v836_v8 = vmax.f32 %v804_v0, 0.0 }
 0x12e   : > { %v818_v11 = vmax.f32 %v786_v3, 0.0  ;;  %v834_v12 = vmax.f32 %v802_v4, 0.0 }
 0x12f   : > { %v1235_v13 = vpack.c.bf16 %v820_v7, %v819_v5  ;;  %v1275_v14 = vpack.c.bf16 %v836_v8, %v835_v6 }
 0x130   : > { %v1230_v15 = vpack.c.bf16 %v818_v11, %v817_v9  ;;  %v1270_v16 = vpack.c.bf16 %v834_v12, %v833_v10  ;;  %v1362_v17 = vpop.f32.mrb[8].mxu0  ;;  %v1378_v18 = vpop.f32.mrb[8].mxu1 }
 0x131   : > { %1299 = vst [vmem:[%s1644_s19 + $0x18] sm:$0xff] %v1235_v13   ;;  %1307 = vst [vmem:[%s1644_s19 + $0x58] sm:$0xff] %v1275_v14   ;;  %v791_v19 = vadd.f32 %v1362_v17, %v1629_v24  ;;  %v807_v20 = vadd.f32 %v1378_v18, %v1629_v24  ;;  %v580_v21 = vpop.f32.mrb[9].mxu0  ;;  %v644_v22 = vpop.f32.mrb[9].mxu1 }
 0x132   : > { %1298 = vst [vmem:[%s1644_s19 + $0x10] sm:$0xff] %v1230_v15   ;;  %1306 = vst [vmem:[%s1644_s19 + $0x50] sm:$0xff] %v1270_v16   ;;  %v789_v23 = vadd.f32 %v1629_v24, %v580_v21  ;;  %v805_v25 = vadd.f32 %v1629_v24, %v644_v22  ;;  %v1363_v26 = vpop.f32.mrb[10].mxu0  ;;  %v1379_v27 = vpop.f32.mrb[10].mxu1 }
 0x133   : > { %v792_v28 = vadd.f32 %v1363_v26, %v1629_v24  ;;  %v808_v29 = vadd.f32 %v1379_v27, %v1629_v24  ;;  %v583_v30 = vpop.f32.mrb[11].mxu0  ;;  %v647_v31 = vpop.f32.mrb[11].mxu1  ;;  %v823_v34 = vmax.f32 %v791_v19, 0.0  ;;  %v839_v35 = vmax.f32 %v807_v20, 0.0 }
 0x134   : > { %v790_v32 = vadd.f32 %v1629_v24, %v583_v30  ;;  %v806_v33 = vadd.f32 %v1629_v24, %v647_v31  ;;  %v821_v38 = vmax.f32 %v789_v23, 0.0  ;;  %v837_v39 = vmax.f32 %v805_v25, 0.0 }
 0x135   : > { %v824_v36 = vmax.f32 %v792_v28, 0.0  ;;  %v840_v37 = vmax.f32 %v808_v29, 0.0 }
 0x136   : > { %v822_v40 = vmax.f32 %v790_v32, 0.0  ;;  %v838_v41 = vmax.f32 %v806_v33, 0.0 }
 0x137   : > { %v1245_v42 = vpack.c.bf16 %v824_v36, %v823_v34  ;;  %v1285_v43 = vpack.c.bf16 %v840_v37, %v839_v35 }
 0x138   : > { %v1240_v44 = vpack.c.bf16 %v822_v40, %v821_v38  ;;  %v1280_v45 = vpack.c.bf16 %v838_v41, %v837_v39  ;;  %v1366_v46 = vpop.f32.mrb[12].mxu0  ;;  %v1382_v47 = vpop.f32.mrb[12].mxu1 }
 0x139   : > { %1301 = vst [vmem:[%s1644_s19 + $0x28] sm:$0xff] %v1245_v42   ;;  %1309 = vst [vmem:[%s1644_s19 + $0x68] sm:$0xff] %v1285_v43   ;;  %v795_v48 = vadd.f32 %v1366_v46, %v1629_v24  ;;  %v811_v49 = vadd.f32 %v1382_v47, %v1629_v24  ;;  %v596_v50 = vpop.f32.mrb[13].mxu0  ;;  %v660_v51 = vpop.f32.mrb[13].mxu1 }
 0x13a   : > { %1300 = vst [vmem:[%s1644_s19 + $0x20] sm:$0xff] %v1240_v44   ;;  %1308 = vst [vmem:[%s1644_s19 + $0x60] sm:$0xff] %v1280_v45   ;;  %v793_v52 = vadd.f32 %v1629_v24, %v596_v50  ;;  %v809_v53 = vadd.f32 %v1629_v24, %v660_v51  ;;  %v1367_v54 = vpop.f32.mrb[14].mxu0  ;;  %v1383_v55 = vpop.f32.mrb[14].mxu1 }
 0x13b   : > { %v796_v56 = vadd.f32 %v1367_v54, %v1629_v24  ;;  %v812_v57 = vadd.f32 %v1383_v55, %v1629_v24  ;;  %v599_v58 = vpop.f32.mrb[15].mxu0  ;;  %v663_v59 = vpop.f32.mrb[15].mxu1  ;;  %v827_v62 = vmax.f32 %v795_v48, 0.0  ;;  %v843_v63 = vmax.f32 %v811_v49, 0.0 }
 0x13c   : > { %v794_v60 = vadd.f32 %v1629_v24, %v599_v58  ;;  %v810_v61 = vadd.f32 %v1629_v24, %v663_v59  ;;  %v825_v2 = vmax.f32 %v793_v52, 0.0  ;;  %v841_v3 = vmax.f32 %v809_v53, 0.0 }
 0x13d   : > { %v828_v0 = vmax.f32 %v796_v56, 0.0  ;;  %v844_v1 = vmax.f32 %v812_v57, 0.0 }
 0x13e   : > { %v826_v4 = vmax.f32 %v794_v60, 0.0  ;;  %v842_v5 = vmax.f32 %v810_v61, 0.0 }
 0x13f   : > { %v1255_v6 = vpack.c.bf16 %v828_v0, %v827_v62  ;;  %v1295_v7 = vpack.c.bf16 %v844_v1, %v843_v63 }
 0x140   : > { %v1250_v8 = vpack.c.bf16 %v826_v4, %v825_v2  ;;  %v1290_v9 = vpack.c.bf16 %v842_v5, %v841_v3 }
 0x141   : > { %1303 = vst [vmem:[%s1644_s19 + $0x38] sm:$0xff] %v1255_v6   ;;  %1311 = vst [vmem:[%s1644_s19 + $0x78] sm:$0xff] %v1295_v7  }
 0x142   : > { %1302 = vst [vmem:[%s1644_s19 + $0x30] sm:$0xff] %v1250_v8   ;;  %1310 = vst [vmem:[%s1644_s19 + $0x70] sm:$0xff] %v1290_v9  }
 0x143 PF: > { %s14_s14 = sadd.s32 1, %s1515_s14   ;;  %s1707_s12 = smov %s1511_s13 }
 0x144   : > { %p11_p4 = scmp.ge.s32.totalorder %s14_s14, 4   ;;  %s1708_s13 = smov %s1710_s16 }
 0x146   :  { %13 = sbr.rel (!%p11_p4) target bundleno = 2 (0x2), region = 79 }
 0x14d   :  { %1033 = vsyncpa [#allocation4], 1 }
 0x14e   :  { %1035 = vsyncpa [#allocation4 + $0x1], 1 }

// kernel: bottleneck_forward.6
= control target key start
LH: loop header
LB: loop body
LE: loop exit
PB: predicated region body
PF: predicated region fallthrough
CT: control target
= control target key end

     0   :  { %s1181_s12 = smov 0   ;;  %s1183_s13 = smov 0   ;;  %s1331_s0 = inlined_call_operand.vmem [shape: bf16[512,128], index: 0, kind: input, shape index: {}]   ;;  %s1332_s1 = inlined_call_operand.vmem [shape: bf16[128,128], index: 1, kind: input, shape index: {}]   ;;  %s1333_s2 = inlined_call_operand.vmem [shape: f32[1,128], index: 2, kind: input, shape index: {}]   ;;  %s1334_s3 = inlined_call_operand.vmem [shape: f32[512,128], index: 3, kind: output, shape index: {}]  }
   0x1   :  { %s1185_s14 = smov 0  }
   0x2 LB: > { %s32_s15 = sadd.s32 1, %s1155_s13  ;;  %p968_p0 = scmp.ge.s32.totalorder %s1159_s14, 1  ;;  %s1159_s14 = sphi %s1185_s14, %s13_s14   ;;  %s1155_s13 = sphi %s1183_s13, %s1336_s13   ;;  %s1151_s12 = sphi %s1181_s12, %s1335_s12  }
   0x3   : > { %p34_p1 = scmp.ge.s32.totalorder %s32_s15, 2  ;;  %p188_p2 = scmp.lt.s32.totalorder %s1159_s14, 3 }
   0x5   : > { %s1338_s15 = smov (%p34_p1, %s32_s15), 0  ;;  %p189_p3 = pnand %p968_p0, %p188_p2 }
   0x6   : > { %v1113_v0 = vld [vmem:[%s1332_s1] sm:$0xff] (!%p189_p3)   ;;  %s969_s18 = sshll.u32 (!%p189_p3), %s1151_s12, 5  ;;  %v1114_v1 = vld [vmem:[%s1332_s1 + $0x8] sm:$0xff] (!%p189_p3)   ;;  %v1115_v2 = vld [vmem:[%s1332_s1 + $0x10] sm:$0xff] (!%p189_p3)  }
   0x7   : > { %192 = sbr.rel (%p189_p3) target bundleno = 281 (0x119), region = 32  ;;  %p230_p4 = scmp.lt.s32.totalorder (!%p189_p3), %s969_s18, 63  ;;  %1024 = vmatprep.subr.bf16.mxu0 (!%p189_p3), %v1113_v0  ;;  %1072 = vmatprep.subr.bf16.mxu1 (!%p189_p3), %v1113_v0  ;;  %v1116_v3 = vld [vmem:[%s1332_s1 + $0x18] sm:$0xff] (!%p189_p3)   ;;  %v1117_v6 = vld [vmem:[%s1332_s1 + $0x20] sm:$0xff] (!%p189_p3)   ;;  %v1118_v7 = vld [vmem:[%s1332_s1 + $0x28] sm:$0xff] (!%p189_p3)  }
   0x8   : > { %1025 = vmatpush3.bf16.msra.mxu0 (!%p189_p3), %v1113_v0  ;;  %1080 = vmatpush3.bf16.msra.mxu1 (!%p189_p3), %v1113_v0  ;;  %v1119_v8 = vld [vmem:[%s1332_s1 + $0x30] sm:$0xff] (!%p189_p3)   ;;  %v1120_v9 = vld [vmem:[%s1332_s1 + $0x38] sm:$0xff] (!%p189_p3)   ;;  %v1251_v25 = vld [vmem:[%s1333_s2] ss:$0 sm:$0xff] (!%p189_p3) }
   0x9   : > { %1026 = vmatprep.subr.bf16.mxu0 (!%p189_p3), %v1114_v1  ;;  %1073 = vmatprep.subr.bf16.mxu1 (!%p189_p3), %v1114_v1 }
   0xc   : > { %1027 = vmatpush3.bf16.msra.mxu0 (!%p189_p3), %v1114_v1  ;;  %1081 = vmatpush3.bf16.msra.mxu1 (!%p189_p3), %v1114_v1 }
   0xd   : > { %1028 = vmatprep.subr.bf16.mxu0 (!%p189_p3), %v1115_v2  ;;  %1074 = vmatprep.subr.bf16.mxu1 (!%p189_p3), %v1115_v2 }
   0xe   : > { %s1340_s18 = smov (!%p230_p4, %s969_s18), 63 }
   0xf   : > { %s970_s23 = sshll.u32 %s1340_s18, 2  ;;  %s972_s10 = sshll.u32 %s1340_s18, 3 }
  0x10   : > { %s1214_s26 = scalar_lea.vmem %s1331_s0, %s970_s23  ;;  %1029 = vmatpush3.bf16.msra.mxu0 %v1115_v2  ;;  %1082 = vmatpush3.bf16.msra.mxu1 %v1115_v2  ;;  %s1256_s19 = scalar_lea.vmem %s1334_s3, %s972_s10 }
  0x11   : > { %v1121_v4 = vld [vmem:[%s1214_s26] sm:$0xff]   ;;  %1030 = vmatprep.subr.bf16.mxu0 %v1116_v3  ;;  %1075 = vmatprep.subr.bf16.mxu1 %v1116_v3  ;;  %v1123_v10 = vld [vmem:[%s1214_s26 + $0x8] sm:$0xff]   ;;  %v1125_v12 = vld [vmem:[%s1214_s26 + $0x10] sm:$0xff]  }
  0x12   : > { %v1122_v5 = vld [vmem:[%s1214_s26 + $0x40] sm:$0xff]   ;;  %1040 = vmatprep.mubr.bf16.mxu0 %v1121_v4  ;;  %v1124_v11 = vld [vmem:[%s1214_s26 + $0x48] sm:$0xff]   ;;  %v1126_v13 = vld [vmem:[%s1214_s26 + $0x50] sm:$0xff]  }
  0x13   : > { %1056 = vmatprep.mubr.bf16.mxu1 %v1122_v5  ;;  %v1127_v14 = vld [vmem:[%s1214_s26 + $0x18] sm:$0xff]   ;;  %v1129_v16 = vld [vmem:[%s1214_s26 + $0x20] sm:$0xff]   ;;  %v1131_v18 = vld [vmem:[%s1214_s26 + $0x28] sm:$0xff]  }
  0x14   : > { %1031 = vmatpush3.bf16.msra.mxu0 %v1116_v3  ;;  %1083 = vmatpush3.bf16.msra.mxu1 %v1116_v3  ;;  %v1128_v15 = vld [vmem:[%s1214_s26 + $0x58] sm:$0xff]   ;;  %v1130_v17 = vld [vmem:[%s1214_s26 + $0x60] sm:$0xff]   ;;  %v1132_v19 = vld [vmem:[%s1214_s26 + $0x68] sm:$0xff]  }
  0x15   : > { %1032 = vmatprep.subr.bf16.mxu0 %v1117_v6  ;;  %1076 = vmatprep.subr.bf16.mxu1 %v1117_v6  ;;  %v1133_v20 = vld [vmem:[%s1214_s26 + $0x30] sm:$0xff]   ;;  %v1135_v22 = vld [vmem:[%s1214_s26 + $0x38] sm:$0xff]  }
  0x16   : > { %v1134_v21 = vld [vmem:[%s1214_s26 + $0x70] sm:$0xff]   ;;  %v1136_v23 = vld [vmem:[%s1214_s26 + $0x78] sm:$0xff]  }
  0x18   : > { %1033 = vmatpush3.bf16.msra.mxu0 %v1117_v6  ;;  %1084 = vmatpush3.bf16.msra.mxu1 %v1117_v6 }
  0x19   : > { %1034 = vmatprep.subr.bf16.mxu0 %v1118_v7  ;;  %1077 = vmatprep.subr.bf16.mxu1 %v1118_v7 }
  0x1c   : > { %1035 = vmatpush3.bf16.msra.mxu0 %v1118_v7  ;;  %1085 = vmatpush3.bf16.msra.mxu1 %v1118_v7 }
  0x1d   : > { %1036 = vmatprep.subr.bf16.mxu0 %v1119_v8  ;;  %1078 = vmatprep.subr.bf16.mxu1 %v1119_v8 }
  0x20   : > { %1037 = vmatpush3.bf16.msra.mxu0 %v1119_v8  ;;  %1086 = vmatpush3.bf16.msra.mxu1 %v1119_v8 }
  0x21   : > { %1038 = vmatprep.subr.bf16.mxu0 %v1120_v9  ;;  %1079 = vmatprep.subr.bf16.mxu1 %v1120_v9 }
  0x24   : > { %1039 = vmatpush3.bf16.msra.mxu0 %v1120_v9  ;;  %1087 = vmatpush3.bf16.msra.mxu1 %v1120_v9 }
  0x27   : > { %1041 = vmatmul.mubr.bf16.vlgmr.msra.gmra.mrb[0].mxu0 %v1123_v10  ;;  %1057 = vmatmul.mubr.bf16.vlgmr.msra.gmra.mrb[0].mxu1 %v1124_v11 }
  0x28   : > { %1044 = vmatprep.mubr.bf16.mxu0 %v1125_v12  ;;  %1060 = vmatprep.mubr.bf16.mxu1 %v1126_v13 }
  0x2f   : > { %1045 = vmatmul.mubr.bf16.gmra.mrb[4].mxu0 %v1127_v14  ;;  %1061 = vmatmul.mubr.bf16.gmra.mrb[4].mxu1 %v1128_v15 }
  0x30   : > { %1048 = vmatprep.mubr.bf16.mxu0 %v1129_v16  ;;  %1064 = vmatprep.mubr.bf16.mxu1 %v1130_v17 }
  0x37   : > { %1049 = vmatmul.mubr.bf16.gmra.mrb[8].mxu0 %v1131_v18  ;;  %1065 = vmatmul.mubr.bf16.gmra.mrb[8].mxu1 %v1132_v19 }
  0x38   : > { %1052 = vmatprep.mubr.bf16.mxu0 %v1133_v20  ;;  %1068 = vmatprep.mubr.bf16.mxu1 %v1134_v21 }
  0x3f   : > { %1053 = vmatmul.mubr.bf16.gmra.mrb[12].mxu0 %v1135_v22  ;;  %1069 = vmatmul.mubr.bf16.gmra.mrb[12].mxu1 %v1136_v23 }
  0xfa   : > { %v1042_v24 = vpop.f32.mrb[0].mxu0  ;;  %v1058_v26 = vpop.f32.mrb[0].mxu1 }
  0xfb   : > { %v554_v27 = vpop.f32.mrb[1].mxu0  ;;  %v618_v28 = vpop.f32.mrb[1].mxu1  ;;  %v789_v31 = vadd.f32 %v1042_v24, %v1251_v25  ;;  %v805_v32 = vadd.f32 %v1058_v26, %v1251_v25 }
  0xfc   : > { %v1043_v29 = vpop.f32.mrb[2].mxu0  ;;  %v1059_v30 = vpop.f32.mrb[2].mxu1  ;;  %v787_v35 = vadd.f32 %v1251_v25, %v554_v27  ;;  %v803_v36 = vadd.f32 %v1251_v25, %v618_v28 }
  0xfd   : > { %v557_v33 = vpop.f32.mrb[3].mxu0  ;;  %v621_v34 = vpop.f32.mrb[3].mxu1  ;;  %821 = vst [vmem:[%s1256_s19 + $0x10] sm:$0xff] %v789_v31  ;;  %837 = vst [vmem:[%s1256_s19 + $0x90] sm:$0xff] %v805_v32  ;;  %v790_v37 = vadd.f32 %v1043_v29, %v1251_v25  ;;  %v806_v38 = vadd.f32 %v1059_v30, %v1251_v25 }
  0xfe   : > { %819 = vst [vmem:[%s1256_s19] sm:$0xff] %v787_v35  ;;  %835 = vst [vmem:[%s1256_s19 + $0x80] sm:$0xff] %v803_v36  ;;  %v788_v39 = vadd.f32 %v1251_v25, %v557_v33  ;;  %v804_v40 = vadd.f32 %v1251_v25, %v621_v34 }
  0xff   : > { %822 = vst [vmem:[%s1256_s19 + $0x18] sm:$0xff] %v790_v37  ;;  %838 = vst [vmem:[%s1256_s19 + $0x98] sm:$0xff] %v806_v38 }
 0x100   : > { %820 = vst [vmem:[%s1256_s19 + $0x8] sm:$0xff] %v788_v39  ;;  %836 = vst [vmem:[%s1256_s19 + $0x88] sm:$0xff] %v804_v40 }
 0x102   : > { %v1046_v41 = vpop.f32.mrb[4].mxu0  ;;  %v1062_v42 = vpop.f32.mrb[4].mxu1 }
 0x103   : > { %v570_v43 = vpop.f32.mrb[5].mxu0  ;;  %v634_v44 = vpop.f32.mrb[5].mxu1  ;;  %v793_v47 = vadd.f32 %v1046_v41, %v1251_v25  ;;  %v809_v48 = vadd.f32 %v1062_v42, %v1251_v25 }
 0x104   : > { %v1047_v45 = vpop.f32.mrb[6].mxu0  ;;  %v1063_v46 = vpop.f32.mrb[6].mxu1  ;;  %v791_v51 = vadd.f32 %v1251_v25, %v570_v43  ;;  %v807_v52 = vadd.f32 %v1251_v25, %v634_v44 }
 0x105   : > { %v573_v49 = vpop.f32.mrb[7].mxu0  ;;  %v637_v50 = vpop.f32.mrb[7].mxu1  ;;  %825 = vst [vmem:[%s1256_s19 + $0x30] sm:$0xff] %v793_v47  ;;  %841 = vst [vmem:[%s1256_s19 + $0xb0] sm:$0xff] %v809_v48  ;;  %v794_v53 = vadd.f32 %v1047_v45, %v1251_v25  ;;  %v810_v54 = vadd.f32 %v1063_v46, %v1251_v25 }
 0x106   : > { %823 = vst [vmem:[%s1256_s19 + $0x20] sm:$0xff] %v791_v51  ;;  %839 = vst [vmem:[%s1256_s19 + $0xa0] sm:$0xff] %v807_v52  ;;  %v792_v55 = vadd.f32 %v1251_v25, %v573_v49  ;;  %v808_v56 = vadd.f32 %v1251_v25, %v637_v50 }
 0x107   : > { %826 = vst [vmem:[%s1256_s19 + $0x38] sm:$0xff] %v794_v53  ;;  %842 = vst [vmem:[%s1256_s19 + $0xb8] sm:$0xff] %v810_v54 }
 0x108   : > { %824 = vst [vmem:[%s1256_s19 + $0x28] sm:$0xff] %v792_v55  ;;  %840 = vst [vmem:[%s1256_s19 + $0xa8] sm:$0xff] %v808_v56 }
 0x10a   : > { %v1050_v57 = vpop.f32.mrb[8].mxu0  ;;  %v1066_v58 = vpop.f32.mrb[8].mxu1 }
 0x10b   : > { %v586_v59 = vpop.f32.mrb[9].mxu0  ;;  %v650_v60 = vpop.f32.mrb[9].mxu1  ;;  %v797_v63 = vadd.f32 %v1050_v57, %v1251_v25  ;;  %v813_v0 = vadd.f32 %v1066_v58, %v1251_v25 }
 0x10c   : > { %v1051_v61 = vpop.f32.mrb[10].mxu0  ;;  %v1067_v62 = vpop.f32.mrb[10].mxu1  ;;  %v795_v3 = vadd.f32 %v1251_v25, %v586_v59  ;;  %v811_v4 = vadd.f32 %v1251_v25, %v650_v60 }
 0x10d   : > { %v589_v1 = vpop.f32.mrb[11].mxu0  ;;  %v653_v2 = vpop.f32.mrb[11].mxu1  ;;  %829 = vst [vmem:[%s1256_s19 + $0x50] sm:$0xff] %v797_v63  ;;  %845 = vst [vmem:[%s1256_s19 + $0xd0] sm:$0xff] %v813_v0  ;;  %v798_v5 = vadd.f32 %v1051_v61, %v1251_v25  ;;  %v814_v6 = vadd.f32 %v1067_v62, %v1251_v25 }
 0x10e   : > { %827 = vst [vmem:[%s1256_s19 + $0x40] sm:$0xff] %v795_v3  ;;  %843 = vst [vmem:[%s1256_s19 + $0xc0] sm:$0xff] %v811_v4  ;;  %v796_v7 = vadd.f32 %v1251_v25, %v589_v1  ;;  %v812_v8 = vadd.f32 %v1251_v25, %v653_v2 }
 0x10f   : > { %830 = vst [vmem:[%s1256_s19 + $0x58] sm:$0xff] %v798_v5  ;;  %846 = vst [vmem:[%s1256_s19 + $0xd8] sm:$0xff] %v814_v6 }
 0x110   : > { %828 = vst [vmem:[%s1256_s19 + $0x48] sm:$0xff] %v796_v7  ;;  %844 = vst [vmem:[%s1256_s19 + $0xc8] sm:$0xff] %v812_v8 }
 0x112   : > { %v1054_v9 = vpop.f32.mrb[12].mxu0  ;;  %v1070_v10 = vpop.f32.mrb[12].mxu1 }
 0x113   : > { %v602_v11 = vpop.f32.mrb[13].mxu0  ;;  %v666_v12 = vpop.f32.mrb[13].mxu1  ;;  %v801_v15 = vadd.f32 %v1054_v9, %v1251_v25  ;;  %v817_v16 = vadd.f32 %v1070_v10, %v1251_v25 }
 0x114   : > { %v1055_v13 = vpop.f32.mrb[14].mxu0  ;;  %v1071_v14 = vpop.f32.mrb[14].mxu1  ;;  %v799_v19 = vadd.f32 %v1251_v25, %v602_v11  ;;  %v815_v20 = vadd.f32 %v1251_v25, %v666_v12 }
 0x115   : > { %v605_v17 = vpop.f32.mrb[15].mxu0  ;;  %v669_v18 = vpop.f32.mrb[15].mxu1  ;;  %833 = vst [vmem:[%s1256_s19 + $0x70] sm:$0xff] %v801_v15  ;;  %849 = vst [vmem:[%s1256_s19 + $0xf0] sm:$0xff] %v817_v16  ;;  %v802_v21 = vadd.f32 %v1055_v13, %v1251_v25  ;;  %v818_v22 = vadd.f32 %v1071_v14, %v1251_v25 }
 0x116   : > { %831 = vst [vmem:[%s1256_s19 + $0x60] sm:$0xff] %v799_v19  ;;  %847 = vst [vmem:[%s1256_s19 + $0xe0] sm:$0xff] %v815_v20  ;;  %v800_v23 = vadd.f32 %v1251_v25, %v605_v17  ;;  %v816_v24 = vadd.f32 %v1251_v25, %v669_v18 }
 0x117   : > { %834 = vst [vmem:[%s1256_s19 + $0x78] sm:$0xff] %v802_v21  ;;  %850 = vst [vmem:[%s1256_s19 + $0xf8] sm:$0xff] %v818_v22 }
 0x118   : > { %832 = vst [vmem:[%s1256_s19 + $0x68] sm:$0xff] %v800_v23  ;;  %848 = vst [vmem:[%s1256_s19 + $0xe8] sm:$0xff] %v816_v24 }
 0x119 PF: > { %s13_s14 = sadd.s32 1, %s1159_s14   ;;  %s1335_s12 = smov %s1155_s13 }
 0x11a   : > { %p10_p5 = scmp.ge.s32.totalorder %s13_s14, 4   ;;  %s1336_s13 = smov %s1338_s15 }
 0x11c   :  { %12 = sbr.rel (!%p10_p5) target bundleno = 2 (0x2), region = 76 }

// kernel: bottleneck_forward.5
= control target key start
LH: loop header
LB: loop body
LE: loop exit
PB: predicated region body
PF: predicated region fallthrough
CT: control target
= control target key end

     0   :  { %s2500_s12 = smov 0   ;;  %s2502_s13 = smov 0   ;;  %s2887_s0 = inlined_call_operand.vmem [shape: bf16[512,1152], index: 0, kind: input, shape index: {}]   ;;  %s2888_s1 = inlined_call_operand.vmem [shape: bf16[1152,128], index: 1, kind: input, shape index: {}]   ;;  %s2889_s2 = inlined_call_operand.vmem [shape: f32[1,128], index: 2, kind: input, shape index: {}]   ;;  %s2890_s3 = inlined_call_operand.vmem [shape: bf16[512,128], index: 3, kind: output, shape index: {}]  }
   0x1   :  { %s2504_s14 = smov 0   ;;  %s2506_s15 = smov 0  }
   0x2   :  { %s2508_s16 = smov 0   ;;  %s2510_s17 = smov 0  }
   0x3   :  { %s2512_s18 = smov 0  }
   0x4 LB: > { %s25_s19 = sadd.s32 1, %s2469_s16  ;;  %s32_s20 = sadd.s32 1, %s2473_s17  ;;  %s2477_s18 = sphi %s2512_s18, %s13_s18   ;;  %s2473_s17 = sphi %s2510_s17, %s2896_s17   ;;  %s2469_s16 = sphi %s2508_s16, %s2895_s16   ;;  %s2465_s15 = sphi %s2506_s15, %s2894_s15   ;;  %s2461_s14 = sphi %s2504_s14, %s2893_s14   ;;  %s2457_s13 = sphi %s2502_s13, %s2892_s13   ;;  %s2453_s12 = sphi %s2500_s12, %s2891_s12  }
   0x5   : > { %p26_p0 = scmp.ge.s32.totalorder %s25_s19, 3  ;;  %p48_p1 = scmp.ne.s32.totalorder %s2457_s13, %s2453_s12 }
   0x6   : > { %p49_p2 = scmp.eq.s32.totalorder %s2477_s18, 0  ;;  %s41_s24 = sadd.s32 1, %s2457_s13 }
   0x7   : > { %s2898_s19 = smov (%p26_p0, %s25_s19), 0  ;;  %s2900_s20 = smov (!%p26_p0, %s32_s20), %s2473_s17 }
   0x8   : > { %p50_p3 = por %p49_p2, %p48_p1  ;;  %p34_p4 = scmp.ge.s32.totalorder %s2900_s20, 2 }
   0x9   : > { %s37_s21 = ssub.s32 %s2469_s16, %s2898_s19  ;;  %p1767_p6 = scmp.ge.s32.totalorder %s2477_s18, 6 }
   0xa   : > { %s2902_s20 = smov (%p34_p4, %s2900_s20), 0 }
   0xb   : > { %s36_s22 = ssub.s32 %s2473_s17, %s2902_s20  ;;  %162 = sbr.rel (%p1767_p6) target bundleno = 64 (0x40), region = 20 }
   0xc   : > { %s38_s23 = sor.u32 %s37_s21, %s36_s22 }
   0xd   : > { %p39_p5 = scmp.eq.s32.totalorder %s38_s23, 0 }
   0xf   : > { %s2551_s25 = scalar_select %p39_p5, %s2457_s13, %s41_s24  }
  0x12   : > { %165 = sbr.rel (!%p50_p3) target bundleno = 64 (0x40), region = 24  ;;  %s167_s26 = sand.u32 (%p50_p3), 1, %s2457_s13  }
  0x13   : > { %s171_s27 = smul.u32 (%p50_p3), 3, %s2469_s16 }
  0x14   : > { %s2275_s28 = smul.u32 (%p50_p3), 384, %s167_s26 }
  0x15   : > { %s2276_s29 = smul.u32 (%p50_p3), 288, %s2473_s17 }
  0x16   : > { %s2565_s8 = scalar_lea.vmem (%p50_p3), [#allocation3], %s2275_s28 }
  0x17   : > { %s173_s30 = sadd.s32 (%p50_p3), %s2276_s29, %s171_s27 }
  0x18   : > { %s1770_s4 = sshll.u32 (%p50_p3), %s173_s30, 2 }
  0x19   : > { %s2560_s7 = scalar_lea.vmem %s2887_s0, %s1770_s4 }
  0x1a   : > { %v190_v0 = vld [vmem:[%s2560_s7] sm:$0xff]  ;;  %v194_v2 = vld [vmem:[%s2560_s7 + $0x48] sm:$0xff]  ;;  %v198_v4 = vld [vmem:[%s2560_s7 + $0x90] sm:$0xff] }
  0x1b   : > { %v192_v1 = vld [vmem:[%s2560_s7 + $0x24] sm:$0xff]  ;;  %191 = vst [vmem:[%s2565_s8] sm:$0xff] %v190_v0  ;;  %195 = vst [vmem:[%s2565_s8 + $0x18] sm:$0xff] %v194_v2  ;;  %v196_v3 = vld [vmem:[%s2560_s7 + $0x6c] sm:$0xff] }
  0x1c   : > { %193 = vst [vmem:[%s2565_s8 + $0xc] sm:$0xff] %v192_v1  ;;  %v200_v5 = vld [vmem:[%s2560_s7 + $0xb4] sm:$0xff]  ;;  %197 = vst [vmem:[%s2565_s8 + $0x24] sm:$0xff] %v196_v3  ;;  %v204_v7 = vld [vmem:[%s2560_s7 + $0xfc] sm:$0xff] }
  0x1d   : > { %199 = vst [vmem:[%s2565_s8 + $0x30] sm:$0xff] %v198_v4  ;;  %201 = vst [vmem:[%s2565_s8 + $0x3c] sm:$0xff] %v200_v5  ;;  %v202_v6 = vld [vmem:[%s2560_s7 + $0xd8] sm:$0xff]  ;;  %v206_v8 = vld [vmem:[%s2560_s7 + $0x120] sm:$0xff] }
  0x1e   : > { %203 = vst [vmem:[%s2565_s8 + $0x48] sm:$0xff] %v202_v6  ;;  %205 = vst [vmem:[%s2565_s8 + $0x54] sm:$0xff] %v204_v7  ;;  %v208_v9 = vld [vmem:[%s2560_s7 + $0x144] sm:$0xff]  ;;  %v212_v11 = vld [vmem:[%s2560_s7 + $0x18c] sm:$0xff] }
  0x1f   : > { %207 = vst [vmem:[%s2565_s8 + $0x60] sm:$0xff] %v206_v8  ;;  %v210_v10 = vld [vmem:[%s2560_s7 + $0x168] sm:$0xff]  ;;  %209 = vst [vmem:[%s2565_s8 + $0x6c] sm:$0xff] %v208_v9  ;;  %v214_v12 = vld [vmem:[%s2560_s7 + $0x1b0] sm:$0xff] }
  0x20   : > { %211 = vst [vmem:[%s2565_s8 + $0x78] sm:$0xff] %v210_v10  ;;  %213 = vst [vmem:[%s2565_s8 + $0x84] sm:$0xff] %v212_v11  ;;  %v216_v13 = vld [vmem:[%s2560_s7 + $0x1d4] sm:$0xff]  ;;  %v220_v15 = vld [vmem:[%s2560_s7 + $0x21c] sm:$0xff] }
  0x21   : > { %v218_v14 = vld [vmem:[%s2560_s7 + $0x1f8] sm:$0xff]  ;;  %215 = vst [vmem:[%s2565_s8 + $0x90] sm:$0xff] %v214_v12  ;;  %217 = vst [vmem:[%s2565_s8 + $0x9c] sm:$0xff] %v216_v13  ;;  %v222_v16 = vld [vmem:[%s2560_s7 + $0x240] sm:$0xff] }
  0x22   : > { %219 = vst [vmem:[%s2565_s8 + $0xa8] sm:$0xff] %v218_v14  ;;  %v224_v17 = vld [vmem:[%s2560_s7 + $0x264] sm:$0xff]  ;;  %221 = vst [vmem:[%s2565_s8 + $0xb4] sm:$0xff] %v220_v15  ;;  %v228_v19 = vld [vmem:[%s2560_s7 + $0x2ac] sm:$0xff] }
  0x23   : > { %223 = vst [vmem:[%s2565_s8 + $0xc0] sm:$0xff] %v222_v16  ;;  %225 = vst [vmem:[%s2565_s8 + $0xcc] sm:$0xff] %v224_v17  ;;  %v226_v18 = vld [vmem:[%s2560_s7 + $0x288] sm:$0xff]  ;;  %v230_v20 = vld [vmem:[%s2560_s7 + $0x2d0] sm:$0xff] }
  0x24   : > { %227 = vst [vmem:[%s2565_s8 + $0xd8] sm:$0xff] %v226_v18  ;;  %229 = vst [vmem:[%s2565_s8 + $0xe4] sm:$0xff] %v228_v19  ;;  %v232_v21 = vld [vmem:[%s2560_s7 + $0x2f4] sm:$0xff]  ;;  %v236_v23 = vld [vmem:[%s2560_s7 + $0x33c] sm:$0xff] }
  0x25   : > { %231 = vst [vmem:[%s2565_s8 + $0xf0] sm:$0xff] %v230_v20  ;;  %v234_v22 = vld [vmem:[%s2560_s7 + $0x318] sm:$0xff]  ;;  %233 = vst [vmem:[%s2565_s8 + $0xfc] sm:$0xff] %v232_v21  ;;  %v238_v24 = vld [vmem:[%s2560_s7 + $0x360] sm:$0xff] }
  0x26   : > { %235 = vst [vmem:[%s2565_s8 + $0x108] sm:$0xff] %v234_v22  ;;  %237 = vst [vmem:[%s2565_s8 + $0x114] sm:$0xff] %v236_v23  ;;  %v240_v25 = vld [vmem:[%s2560_s7 + $0x384] sm:$0xff]  ;;  %v244_v27 = vld [vmem:[%s2560_s7 + $0x3cc] sm:$0xff] }
  0x27   : > { %v242_v26 = vld [vmem:[%s2560_s7 + $0x3a8] sm:$0xff]  ;;  %239 = vst [vmem:[%s2565_s8 + $0x120] sm:$0xff] %v238_v24  ;;  %241 = vst [vmem:[%s2565_s8 + $0x12c] sm:$0xff] %v240_v25  ;;  %v246_v28 = vld [vmem:[%s2560_s7 + $0x3f0] sm:$0xff] }
  0x28   : > { %243 = vst [vmem:[%s2565_s8 + $0x138] sm:$0xff] %v242_v26  ;;  %v248_v29 = vld [vmem:[%s2560_s7 + $0x414] sm:$0xff]  ;;  %245 = vst [vmem:[%s2565_s8 + $0x144] sm:$0xff] %v244_v27  ;;  %v252_v31 = vld [vmem:[%s2560_s7 + $0x45c] sm:$0xff] }
  0x29   : > { %247 = vst [vmem:[%s2565_s8 + $0x150] sm:$0xff] %v246_v28  ;;  %249 = vst [vmem:[%s2565_s8 + $0x15c] sm:$0xff] %v248_v29  ;;  %v250_v30 = vld [vmem:[%s2560_s7 + $0x438] sm:$0xff]  ;;  %v1771_v32 = vld [vmem:[%s2560_s7 + $0x8] sm:$0xf] }
  0x2a   : > { %251 = vst [vmem:[%s2565_s8 + $0x168] sm:$0xff] %v250_v30  ;;  %253 = vst [vmem:[%s2565_s8 + $0x174] sm:$0xff] %v252_v31  ;;  %v1773_v33 = vld [vmem:[%s2560_s7 + $0x2c] sm:$0xf]  ;;  %v1775_v34 = vld [vmem:[%s2560_s7 + $0x50] sm:$0xf] }
  0x2b   : > { %1772 = vst [vmem:[%s2565_s8 + $0x8] sm:$0xf] %v1771_v32  ;;  %v1777_v35 = vld [vmem:[%s2560_s7 + $0x74] sm:$0xf]  ;;  %1774 = vst [vmem:[%s2565_s8 + $0x14] sm:$0xf] %v1773_v33 }
  0x2c   : > { %1776 = vst [vmem:[%s2565_s8 + $0x20] sm:$0xf] %v1775_v34  ;;  %1778 = vst [vmem:[%s2565_s8 + $0x2c] sm:$0xf] %v1777_v35  ;;  %v1779_v36 = vld [vmem:[%s2560_s7 + $0x98] sm:$0xf] }
  0x2d   : > { %v1781_v37 = vld [vmem:[%s2560_s7 + $0xbc] sm:$0xf]  ;;  %v1783_v38 = vld [vmem:[%s2560_s7 + $0xe0] sm:$0xf]  ;;  %1780 = vst [vmem:[%s2565_s8 + $0x38] sm:$0xf] %v1779_v36 }
  0x2e   : > { %1782 = vst [vmem:[%s2565_s8 + $0x44] sm:$0xf] %v1781_v37  ;;  %1784 = vst [vmem:[%s2565_s8 + $0x50] sm:$0xf] %v1783_v38  ;;  %v1785_v39 = vld [vmem:[%s2560_s7 + $0x104] sm:$0xf] }
  0x2f   : > { %v1787_v40 = vld [vmem:[%s2560_s7 + $0x128] sm:$0xf]  ;;  %v1789_v41 = vld [vmem:[%s2560_s7 + $0x14c] sm:$0xf]  ;;  %1786 = vst [vmem:[%s2565_s8 + $0x5c] sm:$0xf] %v1785_v39 }
  0x30   : > { %1788 = vst [vmem:[%s2565_s8 + $0x68] sm:$0xf] %v1787_v40  ;;  %1790 = vst [vmem:[%s2565_s8 + $0x74] sm:$0xf] %v1789_v41  ;;  %v1791_v42 = vld [vmem:[%s2560_s7 + $0x170] sm:$0xf] }
  0x31   : > { %v1793_v43 = vld [vmem:[%s2560_s7 + $0x194] sm:$0xf]  ;;  %v1795_v44 = vld [vmem:[%s2560_s7 + $0x1b8] sm:$0xf]  ;;  %1792 = vst [vmem:[%s2565_s8 + $0x80] sm:$0xf] %v1791_v42 }
  0x32   : > { %1794 = vst [vmem:[%s2565_s8 + $0x8c] sm:$0xf] %v1793_v43  ;;  %1796 = vst [vmem:[%s2565_s8 + $0x98] sm:$0xf] %v1795_v44  ;;  %v1797_v45 = vld [vmem:[%s2560_s7 + $0x1dc] sm:$0xf] }
  0x33   : > { %v1799_v46 = vld [vmem:[%s2560_s7 + $0x200] sm:$0xf]  ;;  %v1801_v47 = vld [vmem:[%s2560_s7 + $0x224] sm:$0xf]  ;;  %1798 = vst [vmem:[%s2565_s8 + $0xa4] sm:$0xf] %v1797_v45 }
  0x34   : > { %1800 = vst [vmem:[%s2565_s8 + $0xb0] sm:$0xf] %v1799_v46  ;;  %1802 = vst [vmem:[%s2565_s8 + $0xbc] sm:$0xf] %v1801_v47  ;;  %v1803_v48 = vld [vmem:[%s2560_s7 + $0x248] sm:$0xf] }
  0x35   : > { %v1805_v49 = vld [vmem:[%s2560_s7 + $0x26c] sm:$0xf]  ;;  %v1807_v50 = vld [vmem:[%s2560_s7 + $0x290] sm:$0xf]  ;;  %1804 = vst [vmem:[%s2565_s8 + $0xc8] sm:$0xf] %v1803_v48 }
  0x36   : > { %1806 = vst [vmem:[%s2565_s8 + $0xd4] sm:$0xf] %v1805_v49  ;;  %1808 = vst [vmem:[%s2565_s8 + $0xe0] sm:$0xf] %v1807_v50  ;;  %v1809_v51 = vld [vmem:[%s2560_s7 + $0x2b4] sm:$0xf] }
  0x37   : > { %v1811_v52 = vld [vmem:[%s2560_s7 + $0x2d8] sm:$0xf]  ;;  %v1813_v53 = vld [vmem:[%s2560_s7 + $0x2fc] sm:$0xf]  ;;  %1810 = vst [vmem:[%s2565_s8 + $0xec] sm:$0xf] %v1809_v51 }
  0x38   : > { %1812 = vst [vmem:[%s2565_s8 + $0xf8] sm:$0xf] %v1811_v52  ;;  %1814 = vst [vmem:[%s2565_s8 + $0x104] sm:$0xf] %v1813_v53  ;;  %v1815_v54 = vld [vmem:[%s2560_s7 + $0x320] sm:$0xf] }
  0x39   : > { %v1817_v55 = vld [vmem:[%s2560_s7 + $0x344] sm:$0xf]  ;;  %v1819_v56 = vld [vmem:[%s2560_s7 + $0x368] sm:$0xf]  ;;  %1816 = vst [vmem:[%s2565_s8 + $0x110] sm:$0xf] %v1815_v54 }
  0x3a   : > { %1818 = vst [vmem:[%s2565_s8 + $0x11c] sm:$0xf] %v1817_v55  ;;  %1820 = vst [vmem:[%s2565_s8 + $0x128] sm:$0xf] %v1819_v56  ;;  %v1821_v57 = vld [vmem:[%s2560_s7 + $0x38c] sm:$0xf] }
  0x3b   : > { %v1823_v58 = vld [vmem:[%s2560_s7 + $0x3b0] sm:$0xf]  ;;  %v1825_v59 = vld [vmem:[%s2560_s7 + $0x3d4] sm:$0xf]  ;;  %1822 = vst [vmem:[%s2565_s8 + $0x134] sm:$0xf] %v1821_v57 }
  0x3c   : > { %1824 = vst [vmem:[%s2565_s8 + $0x140] sm:$0xf] %v1823_v58  ;;  %1826 = vst [vmem:[%s2565_s8 + $0x14c] sm:$0xf] %v1825_v59  ;;  %v1827_v60 = vld [vmem:[%s2560_s7 + $0x3f8] sm:$0xf] }
  0x3d   : > { %v1829_v61 = vld [vmem:[%s2560_s7 + $0x41c] sm:$0xf]  ;;  %v1831_v62 = vld [vmem:[%s2560_s7 + $0x440] sm:$0xf]  ;;  %1828 = vst [vmem:[%s2565_s8 + $0x158] sm:$0xf] %v1827_v60 }
  0x3e   : > { %1830 = vst [vmem:[%s2565_s8 + $0x164] sm:$0xf] %v1829_v61  ;;  %1832 = vst [vmem:[%s2565_s8 + $0x170] sm:$0xf] %v1831_v62  ;;  %v1833_v63 = vld [vmem:[%s2560_s7 + $0x464] sm:$0xf] }
  0x3f   : > { %1834 = vst [vmem:[%s2565_s8 + $0x17c] sm:$0xf] %v1833_v63 }
  0x40 PF: > { %p1835_p7 = scmp.ge.s32.totalorder %s2477_s18, 1  ;;  %p341_p8 = scmp.lt.s32.totalorder %s2477_s18, 7 }
  0x42   : > { %p342_p9 = pnand %p1835_p7, %p341_p8 }
  0x43   : > { %s348_s9 = sand.u32 (!%p342_p9), 1, %s2453_s12   ;;  %s387_s10 = smul.u32 (!%p342_p9), 48, %s2461_s14 }
  0x44   : > { %345 = sbr.rel (%p342_p9) target bundleno = 456 (0x1c8), region = 54  ;;  %s1837_s21 = sshll.u32 (!%p342_p9), %s2465_s15, 5 }
  0x45   : > { %s2277_s11 = smul.u32 (!%p342_p9), 384, %s348_s9  ;;  %p388_p10 = scmp.lt.s32.totalorder (!%p342_p9), %s387_s10, 143 }
  0x46   : > { %p400_p11 = scmp.lt.s32.totalorder (!%p342_p9), %s1837_s21, 63  ;;  %p1839_p12 = scmp.ne.s32.totalorder (!%p342_p9), %s2461_s14, 0 }
  0x47   : > { %s2707_s12 = scalar_lea.vmem (!%p342_p9), [#allocation3], %s2277_s11 }
  0x4b   : > { %s2904_s10 = smov (!%p388_p10, %s387_s10), 143  ;;  %s2906_s21 = smov (!%p400_p11, %s1837_s21), 63 }
  0x4c   : > { %s1836_s22 = sshll.u32 %s2904_s10, 2  ;;  %s1838_s27 = sshll.u32 %s2906_s21, 2  ;;  %v2479_v0 = vmov (!%p1839_p12), 0.0  }
  0x4d   : > { %s2700_s26 = scalar_lea.vmem %s2888_s1, %s1836_s22  ;;  %s2705_s30 = scalar_lea.vmem %s2890_s3, %s1838_s27  ;;  %413 = vst [vmem:[#allocation2] sm:$0xff] (!%p1839_p12), %v2479_v0  ;;  %414 = vst [vmem:[#allocation2 + $0x8] sm:$0xff] (!%p1839_p12), %v2479_v0 }
  0x4e   : > { %412 = sbr.rel (%p1839_p12) target bundleno = 93 (0x5d), region = 62  ;;  %415 = vst [vmem:[#allocation2 + $0x10] sm:$0xff] (!%p1839_p12), %v2479_v0  ;;  %416 = vst [vmem:[#allocation2 + $0x18] sm:$0xff] (!%p1839_p12), %v2479_v0 }
  0x4f   : > { %417 = vst [vmem:[#allocation2 + $0x20] sm:$0xff] (!%p1839_p12), %v2479_v0  ;;  %418 = vst [vmem:[#allocation2 + $0x28] sm:$0xff] (!%p1839_p12), %v2479_v0 }
  0x50   : > { %419 = vst [vmem:[#allocation2 + $0x30] sm:$0xff] (!%p1839_p12), %v2479_v0  ;;  %420 = vst [vmem:[#allocation2 + $0x38] sm:$0xff] (!%p1839_p12), %v2479_v0 }
  0x51   : > { %421 = vst [vmem:[#allocation2 + $0x40] sm:$0xff] (!%p1839_p12), %v2479_v0  ;;  %422 = vst [vmem:[#allocation2 + $0x48] sm:$0xff] (!%p1839_p12), %v2479_v0 }
  0x52   : > { %423 = vst [vmem:[#allocation2 + $0x50] sm:$0xff] (!%p1839_p12), %v2479_v0  ;;  %424 = vst [vmem:[#allocation2 + $0x58] sm:$0xff] (!%p1839_p12), %v2479_v0 }
  0x53   : > { %425 = vst [vmem:[#allocation2 + $0x60] sm:$0xff] (!%p1839_p12), %v2479_v0  ;;  %426 = vst [vmem:[#allocation2 + $0x68] sm:$0xff] (!%p1839_p12), %v2479_v0 }
  0x54   : > { %427 = vst [vmem:[#allocation2 + $0x70] sm:$0xff] (!%p1839_p12), %v2479_v0  ;;  %428 = vst [vmem:[#allocation2 + $0x78] sm:$0xff] (!%p1839_p12), %v2479_v0 }
  0x55   : > { %429 = vst [vmem:[#allocation2 + $0x80] sm:$0xff] %v2479_v0  ;;  %430 = vst [vmem:[#allocation2 + $0x88] sm:$0xff] %v2479_v0 }
  0x56   : > { %431 = vst [vmem:[#allocation2 + $0x90] sm:$0xff] %v2479_v0  ;;  %432 = vst [vmem:[#allocation2 + $0x98] sm:$0xff] %v2479_v0 }
  0x57   : > { %433 = vst [vmem:[#allocation2 + $0xa0] sm:$0xff] %v2479_v0  ;;  %434 = vst [vmem:[#allocation2 + $0xa8] sm:$0xff] %v2479_v0 }
  0x58   : > { %435 = vst [vmem:[#allocation2 + $0xb0] sm:$0xff] %v2479_v0  ;;  %436 = vst [vmem:[#allocation2 + $0xb8] sm:$0xff] %v2479_v0 }
  0x59   : > { %437 = vst [vmem:[#allocation2 + $0xc0] sm:$0xff] %v2479_v0  ;;  %438 = vst [vmem:[#allocation2 + $0xc8] sm:$0xff] %v2479_v0 }
  0x5a   : > { %439 = vst [vmem:[#allocation2 + $0xd0] sm:$0xff] %v2479_v0  ;;  %440 = vst [vmem:[#allocation2 + $0xd8] sm:$0xff] %v2479_v0 }
  0x5b   : > { %441 = vst [vmem:[#allocation2 + $0xe0] sm:$0xff] %v2479_v0  ;;  %442 = vst [vmem:[#allocation2 + $0xe8] sm:$0xff] %v2479_v0 }
  0x5c   : > { %443 = vst [vmem:[#allocation2 + $0xf0] sm:$0xff] %v2479_v0  ;;  %444 = vst [vmem:[#allocation2 + $0xf8] sm:$0xff] %v2479_v0 }
  0x5d PF: > { %v2335_v1 = vld [vmem:[%s2700_s26 + $0x40] sm:$0xff]   ;;  %v2337_v3 = vld [vmem:[%s2700_s26 + $0x48] sm:$0xff]   ;;  %v2339_v5 = vld [vmem:[%s2700_s26 + $0x50] sm:$0xff]   ;;  %p1912_p13 = scmp.ne.s32.totalorder %s2461_s14, 2 }
  0x5e   : > { %v2336_v2 = vld [vmem:[%s2700_s26] sm:$0xff]   ;;  %2075 = vmatprep.subr.bf16.mxu0 %v2335_v1  ;;  %2259 = vmatprep.subr.bf16.mxu1 %v2335_v1  ;;  %v2338_v4 = vld [vmem:[%s2700_s26 + $0x8] sm:$0xff]   ;;  %v2340_v6 = vld [vmem:[%s2700_s26 + $0x10] sm:$0xff]  }
  0x5f   : > { %2076 = vmatpush3.bf16.msra.mxu0 %v2336_v2  ;;  %2267 = vmatpush3.bf16.msra.mxu1 %v2336_v2  ;;  %v2341_v7 = vld [vmem:[%s2700_s26 + $0x58] sm:$0xff]   ;;  %v2343_v9 = vld [vmem:[%s2700_s26 + $0x60] sm:$0xff]   ;;  %v2345_v11 = vld [vmem:[%s2700_s26 + $0x68] sm:$0xff]  }
  0x60   : > { %2077 = vmatprep.subr.bf16.mxu0 %v2337_v3  ;;  %2260 = vmatprep.subr.bf16.mxu1 %v2337_v3  ;;  %v2342_v8 = vld [vmem:[%s2700_s26 + $0x18] sm:$0xff]   ;;  %v2344_v10 = vld [vmem:[%s2700_s26 + $0x20] sm:$0xff]   ;;  %v2346_v14 = vld [vmem:[%s2700_s26 + $0x28] sm:$0xff]  }
  0x61   : > { %v2353_v12 = vld [vmem:[%s2707_s12 + $0x4] ss:$12 sps:$4 sm:$0xff]   ;;  %v2349_v17 = vld [vmem:[%s2700_s26 + $0x78] sm:$0xff]   ;;  %v2351_v20 = vld [vmem:[%s2707_s12] ss:$12 sps:$4 sm:$0xff]  }
  0x62   : > { %v2356_v13 = vld [vmem:[%s2707_s12 + $0x124] ss:$12 sps:$4 sm:$0xff]   ;;  %1021 = vmatprep.mubr.bf16.mxu0 %v2353_v12  ;;  %v2350_v18 = vld [vmem:[%s2700_s26 + $0x38] sm:$0xff]   ;;  %v2354_v21 = vld [vmem:[%s2707_s12 + $0x120] ss:$12 sps:$4 sm:$0xff]  }
  0x63   : > { %2078 = vmatpush3.bf16.msra.mxu0 %v2338_v4  ;;  %2268 = vmatpush3.bf16.msra.mxu1 %v2338_v4  ;;  %v2347_v15 = vld [vmem:[%s2700_s26 + $0x70] sm:$0xff]   ;;  %v2357_v19 = vld [vmem:[%s2700_s26 + $0x80] sm:$0xff]   ;;  %v2359_v22 = vld [vmem:[%s2707_s12 + $0x1c] ss:$12 sps:$4 sm:$0xff]  }
  0x64   : > { %2079 = vmatprep.subr.bf16.mxu0 %v2339_v5  ;;  %2261 = vmatprep.subr.bf16.mxu1 %v2339_v5  ;;  %v2348_v16 = vld [vmem:[%s2700_s26 + $0x30] sm:$0xff]   ;;  %v2358_v23 = vld [vmem:[%s2700_s26 + $0x88] sm:$0xff]   ;;  %v2363_v25 = vld [vmem:[%s2707_s12 + $0x18] ss:$12 sps:$4 sm:$0xff]  }
  0x65   : > { %1117 = vmatprep.mubr.bf16.mxu1 %v2356_v13  ;;  %v2361_v24 = vld [vmem:[%s2707_s12 + $0x13c] ss:$12 sps:$4 sm:$0xff]   ;;  %v2365_v26 = vld [vmem:[%s2700_s26 + $0x90] sm:$0xff]   ;;  %v2364_v27 = vld [vmem:[%s2707_s12 + $0x138] ss:$12 sps:$4 sm:$0xff]  }
  0x66   : > { %v2366_v28 = vld [vmem:[%s2700_s26 + $0x98] sm:$0xff]   ;;  %v2367_v29 = vld [vmem:[%s2707_s12 + $0x34] ss:$12 sps:$4 sm:$0xff]   ;;  %v2374_v34 = vld [vmem:[%s2700_s26 + $0xa8] sm:$0xff]  }
  0x67   : > { %2080 = vmatpush3.bf16.msra.mxu0 %v2340_v6  ;;  %2269 = vmatpush3.bf16.msra.mxu1 %v2340_v6  ;;  %v2369_v30 = vld [vmem:[%s2707_s12 + $0x154] ss:$12 sps:$4 sm:$0xff]   ;;  %v2371_v32 = vld [vmem:[%s2707_s12 + $0x30] ss:$12 sps:$4 sm:$0xff]   ;;  %v2375_v35 = vld [vmem:[%s2707_s12 + $0x4c] ss:$12 sps:$4 sm:$0xff]  }
  0x68   : > { %2081 = vmatprep.subr.bf16.mxu0 %v2341_v7  ;;  %2262 = vmatprep.subr.bf16.mxu1 %v2341_v7  ;;  %v2373_v31 = vld [vmem:[%s2700_s26 + $0xa0] sm:$0xff]   ;;  %v2372_v33 = vld [vmem:[%s2707_s12 + $0x150] ss:$12 sps:$4 sm:$0xff]   ;;  %v2377_v36 = vld [vmem:[%s2707_s12 + $0x16c] ss:$12 sps:$4 sm:$0xff]  }
  0x69   : > { %v2381_v37 = vld [vmem:[%s2700_s26 + $0xb0] sm:$0xff]   ;;  %v2382_v41 = vld [vmem:[%s2700_s26 + $0xb8] sm:$0xff]   ;;  %v2386_v43 = vld [vmem:[%s2707_s12 + $0x60] ss:$12 sps:$4 sm:$0xff]  }
  0x6a   : > { %v2379_v38 = vld [vmem:[%s2707_s12 + $0x48] ss:$12 sps:$4 sm:$0xff]   ;;  %v2383_v40 = vld [vmem:[%s2707_s12 + $0x64] ss:$12 sps:$4 sm:$0xff]   ;;  %v2387_v44 = vld [vmem:[%s2707_s12 + $0x20] ss:$12 sps:$4 sm:$0xff]  }
  0x6b   : > { %2082 = vmatpush3.bf16.msra.mxu0 %v2342_v8  ;;  %2270 = vmatpush3.bf16.msra.mxu1 %v2342_v8  ;;  %v2380_v39 = vld [vmem:[%s2707_s12 + $0x168] ss:$12 sps:$4 sm:$0xff]   ;;  %v2390_v46 = vld [vmem:[%s2707_s12 + $0x38] ss:$12 sps:$4 sm:$0xff]   ;;  %v2392_v48 = vld [vmem:[%s2707_s12 + $0x50] ss:$12 sps:$4 sm:$0xff]  }
  0x6c   : > { %2083 = vmatprep.subr.bf16.mxu0 %v2343_v9  ;;  %2263 = vmatprep.subr.bf16.mxu1 %v2343_v9  ;;  %v2385_v42 = vld [vmem:[%s2707_s12 + $0x8] ss:$12 sps:$4 sm:$0xff]   ;;  %v2391_v47 = vld [vmem:[%s2707_s12 + $0x78] ss:$12 sps:$4 sm:$0xff]   ;;  %v2396_v51 = vld [vmem:[%s2707_s12 + $0x90] ss:$12 sps:$4 sm:$0xff]  }
  0x6d   : > { %v2388_v45 = vld [vmem:[%s2707_s12 + $0x7c] ss:$12 sps:$4 sm:$0xff]   ;;  %v2393_v49 = vld [vmem:[%s2707_s12 + $0x94] ss:$12 sps:$4 sm:$0xff]   ;;  %v2398_v53 = vld [vmem:[%s2707_s12 + $0xac] ss:$12 sps:$4 sm:$0xff]  }
  0x6e   : > { %v2395_v50 = vld [vmem:[%s2707_s12 + $0x68] ss:$12 sps:$4 sm:$0xff]   ;;  %v2397_v52 = vld [vmem:[%s2707_s12 + $0x80] ss:$12 sps:$4 sm:$0xff]   ;;  %v2400_v54 = vld [vmem:[%s2707_s12 + $0x98] ss:$12 sps:$4 sm:$0xff]  }
  0x6f   : > { %2084 = vmatpush3.bf16.msra.mxu0 %v2344_v10  ;;  %2271 = vmatpush3.bf16.msra.mxu1 %v2344_v10  ;;  %v2401_v55 = vld [vmem:[%s2707_s12 + $0xa8] ss:$12 sps:$4 sm:$0xff]   ;;  %v2402_v56 = vld [vmem:[%s2707_s12 + $0xb0] ss:$12 sps:$4 sm:$0xff]   ;;  %v2406_v59 = vld [vmem:[%s2707_s12 + $0xc0] ss:$12 sps:$4 sm:$0xff]  }
  0x70   : > { %2085 = vmatprep.subr.bf16.mxu0 %v2345_v11  ;;  %2264 = vmatprep.subr.bf16.mxu1 %v2345_v11  ;;  %v2403_v57 = vld [vmem:[%s2707_s12 + $0xc4] ss:$12 sps:$4 sm:$0xff]   ;;  %v2405_v58 = vld [vmem:[%s2707_s12 + $0xc8] ss:$12 sps:$4 sm:$0xff]   ;;  %v2407_v60 = vld [vmem:[%s2707_s12 + $0xe0] ss:$12 sps:$4 sm:$0xff]  }
  0x71   : > { %v2408_v61 = vld [vmem:[%s2707_s12 + $0xdc] ss:$12 sps:$4 sm:$0xff]   ;;  %v2410_v62 = vld [vmem:[%s2707_s12 + $0xf8] ss:$12 sps:$4 sm:$0xff]   ;;  %v2413_v1 = vld [vmem:[%s2707_s12 + $0xf4] ss:$12 sps:$4 sm:$0xff]  }
  0x72   : > { %v2411_v63 = vld [vmem:[%s2707_s12 + $0xd8] ss:$12 sps:$4 sm:$0xff]   ;;  %v2412_v0 = vld [vmem:[%s2707_s12 + $0x110] ss:$12 sps:$4 sm:$0xff]   ;;  %v2415_v2 = vld [vmem:[%s2707_s12 + $0x128] ss:$12 sps:$4 sm:$0xff]  }
  0x73   : > { %2086 = vmatpush3.bf16.msra.mxu0 %v2346_v14  ;;  %2272 = vmatpush3.bf16.msra.mxu1 %v2346_v14  ;;  %v2416_v3 = vld [vmem:[%s2707_s12 + $0xf0] ss:$12 sps:$4 sm:$0xff]   ;;  %v2417_v4 = vld [vmem:[%s2707_s12 + $0x140] ss:$12 sps:$4 sm:$0xff]   ;;  %v2420_v6 = vld [vmem:[%s2707_s12 + $0x158] ss:$12 sps:$4 sm:$0xff]  }
  0x74   : > { %2087 = vmatprep.subr.bf16.mxu0 %v2347_v15  ;;  %2265 = vmatprep.subr.bf16.mxu1 %v2347_v15  ;;  %v2418_v5 = vld [vmem:[%s2707_s12 + $0x10c] ss:$12 sps:$4 sm:$0xff]   ;;  %v2421_v7 = vld [vmem:[%s2707_s12 + $0x108] ss:$12 sps:$4 sm:$0xff]   ;;  %v2422_v8 = vld [vmem:[%s2707_s12 + $0x170] ss:$12 sps:$4 sm:$0xff]  }
  0x77   : > { %2088 = vmatpush3.bf16.msra.mxu0 %v2348_v16  ;;  %2273 = vmatpush3.bf16.msra.mxu1 %v2348_v16 }
  0x78   : > { %2089 = vmatprep.subr.bf16.mxu0 %v2349_v17  ;;  %2266 = vmatprep.subr.bf16.mxu1 %v2349_v17 }
  0x7b   : > { %2090 = vmatpush3.bf16.msra.mxu0 %v2350_v18  ;;  %2274 = vmatpush3.bf16.msra.mxu1 %v2350_v18 }
  0x7c   : > { %2211 = vmatprep.subr.bf16.mxu1 %v2357_v19 }
  0x7e   : > { %1022 = vmatmul.mubr.bf16.vlgmr.msra.gmra.mrb[0].mxu0 %v2351_v20  ;;  %1118 = vmatmul.mubr.bf16.vlgmr.msra.gmra.mrb[0].mxu1 %v2354_v21 }
  0x7f   : > { %2212 = vmatpush3.bf16.msra.mxu1 %v2357_v19  ;;  %1029 = vmatprep.mubr.bf16.mxu0 %v2359_v22 }
  0x80   : > { %2213 = vmatprep.subr.bf16.mxu1 %v2358_v23  ;;  %1125 = vmatprep.mubr.bf16.mxu1 %v2361_v24 }
  0x83   : > { %2214 = vmatpush3.bf16.msra.mxu1 %v2358_v23 }
  0x84   : > { %2215 = vmatprep.subr.bf16.mxu1 %v2365_v26 }
  0x86   : > { %1030 = vmatmul.mubr.bf16.gmra.mrb[4].mxu0 %v2363_v25  ;;  %1126 = vmatmul.mubr.bf16.gmra.mrb[4].mxu1 %v2364_v27 }
  0x87   : > { %2216 = vmatpush3.bf16.msra.mxu1 %v2365_v26  ;;  %1037 = vmatprep.mubr.bf16.mxu0 %v2367_v29 }
  0x88   : > { %2217 = vmatprep.subr.bf16.mxu1 %v2366_v28  ;;  %1133 = vmatprep.mubr.bf16.mxu1 %v2369_v30 }
  0x8b   : > { %2218 = vmatpush3.bf16.msra.mxu1 %v2366_v28 }
  0x8c   : > { %2219 = vmatprep.subr.bf16.mxu1 %v2373_v31 }
  0x8e   : > { %1038 = vmatmul.mubr.bf16.gmra.mrb[8].mxu0 %v2371_v32  ;;  %1134 = vmatmul.mubr.bf16.gmra.mrb[8].mxu1 %v2372_v33 }
  0x8f   : > { %2220 = vmatpush3.bf16.msra.mxu1 %v2373_v31  ;;  %1045 = vmatprep.mubr.bf16.mxu0 %v2375_v35 }
  0x90   : > { %2221 = vmatprep.subr.bf16.mxu1 %v2374_v34  ;;  %1141 = vmatprep.mubr.bf16.mxu1 %v2377_v36 }
  0x93   : > { %2222 = vmatpush3.bf16.msra.mxu1 %v2374_v34 }
  0x94   : > { %2223 = vmatprep.subr.bf16.mxu1 %v2381_v37 }
  0x96   : > { %1046 = vmatmul.mubr.bf16.gmra.mrb[12].mxu0 %v2379_v38  ;;  %1142 = vmatmul.mubr.bf16.gmra.mrb[12].mxu1 %v2380_v39 }
  0x97   : > { %2224 = vmatpush3.bf16.msra.mxu1 %v2381_v37  ;;  %1053 = vmatprep.mubr.bf16.mxu0 %v2383_v40 }
  0x98   : > { %2225 = vmatprep.subr.bf16.mxu1 %v2382_v41  ;;  %2227 = vmatprep.mubr.bf16.mxu1 %v2385_v42 }
  0x9b   : > { %2226 = vmatpush3.bf16.msra.mxu1 %v2382_v41 }
  0x9e   : > { %1054 = vmatmul.mubr.bf16.gmra.mrb[16].mxu0 %v2386_v43  ;;  %2228 = vmatmul.mubr.bf16.vlgmr.msra.gmra.mrb[16].mxu1 %v2387_v44 }
  0x9f   : > { %1061 = vmatprep.mubr.bf16.mxu0 %v2388_v45  ;;  %2231 = vmatprep.mubr.bf16.mxu1 %v2390_v46 }
  0xa6   : > { %1062 = vmatmul.mubr.bf16.gmra.mrb[20].mxu0 %v2391_v47  ;;  %2232 = vmatmul.mubr.bf16.gmra.mrb[20].mxu1 %v2392_v48 }
  0xa7   : > { %1069 = vmatprep.mubr.bf16.mxu0 %v2393_v49  ;;  %2235 = vmatprep.mubr.bf16.mxu1 %v2395_v50 }
  0xae   : > { %1070 = vmatmul.mubr.bf16.gmra.mrb[24].mxu0 %v2396_v51  ;;  %2236 = vmatmul.mubr.bf16.gmra.mrb[24].mxu1 %v2397_v52 }
  0xaf   : > { %1077 = vmatprep.mubr.bf16.mxu0 %v2398_v53  ;;  %2239 = vmatprep.mubr.bf16.mxu1 %v2400_v54 }
  0xb6   : > { %1078 = vmatmul.mubr.bf16.gmra.mrb[28].mxu0 %v2401_v55  ;;  %2240 = vmatmul.mubr.bf16.gmra.mrb[28].mxu1 %v2402_v56 }
  0xb7   : > { %1085 = vmatprep.mubr.bf16.mxu0 %v2403_v57  ;;  %2243 = vmatprep.mubr.bf16.mxu1 %v2405_v58  ;;  %v447_v58 = vld [vmem:[#allocation2 + $0x10] sm:$0xff] }
  0xbe   : > { %1086 = vmatmul.mubr.bf16.gmra.mrb[32].mxu0 %v2406_v59  ;;  %2244 = vmatmul.mubr.bf16.gmra.mrb[32].mxu1 %v2407_v60 }
  0xbf   : > { %1093 = vmatprep.mubr.bf16.mxu0 %v2408_v61  ;;  %2247 = vmatprep.mubr.bf16.mxu1 %v2410_v62  ;;  %v445_v62 = vld [vmem:[#allocation2] sm:$0xff] }
  0xc6   : > { %1094 = vmatmul.mubr.bf16.gmra.mrb[36].mxu0 %v2411_v63  ;;  %2248 = vmatmul.mubr.bf16.gmra.mrb[36].mxu1 %v2412_v0 }
  0xc7   : > { %1101 = vmatprep.mubr.bf16.mxu0 %v2413_v1  ;;  %2251 = vmatprep.mubr.bf16.mxu1 %v2415_v2 }
  0xce   : > { %1102 = vmatmul.mubr.bf16.gmra.mrb[40].mxu0 %v2416_v3  ;;  %2252 = vmatmul.mubr.bf16.gmra.mrb[40].mxu1 %v2417_v4  ;;  %v448_v3 = vld [vmem:[#allocation2 + $0x18] sm:$0xff] }
  0xcf   : > { %1109 = vmatprep.mubr.bf16.mxu0 %v2418_v5  ;;  %2255 = vmatprep.mubr.bf16.mxu1 %v2420_v6 }
  0xd6   : > { %1110 = vmatmul.mubr.bf16.gmra.mrb[44].mxu0 %v2421_v7  ;;  %2256 = vmatmul.mubr.bf16.gmra.mrb[44].mxu1 %v2422_v8  ;;  %v446_v8 = vld [vmem:[#allocation2 + $0x8] sm:$0xff] }
 0x151   : > { %v2091_v9 = vpop.f32.mrb[0].mxu0  ;;  %v2163_v10 = vpop.f32.mrb[0].mxu1 }
 0x152   : > { %v2092_v11 = vpop.f32.mrb[1].mxu0  ;;  %v2164_v12 = vpop.f32.mrb[1].mxu1 }
 0x153   : > { %v2093_v13 = vadd.f32 %v2092_v11, %v2091_v9  ;;  %v2782_v14 = vadd.f32 %v2164_v12, %v2163_v10  ;;  %v2094_v15 = vpop.f32.mrb[2].mxu0  ;;  %v2166_v16 = vpop.f32.mrb[2].mxu1 }
 0x154   : > { %v2095_v17 = vpop.f32.mrb[3].mxu0  ;;  %v2167_v18 = vpop.f32.mrb[3].mxu1 }
 0x155   : > { %v2096_v19 = vadd.f32 %v2095_v17, %v2094_v15  ;;  %v2784_v20 = vadd.f32 %v2167_v18, %v2166_v16  ;;  %v451_v18 = vld [vmem:[#allocation2 + $0x30] sm:$0xff] }
 0x159   : > { %v2097_v21 = vpop.f32.mrb[4].mxu0  ;;  %v2169_v22 = vpop.f32.mrb[4].mxu1 }
 0x15a   : > { %v2098_v23 = vpop.f32.mrb[5].mxu0  ;;  %v2170_v24 = vpop.f32.mrb[5].mxu1 }
 0x15b   : > { %v2099_v25 = vadd.f32 %v2098_v23, %v2097_v21  ;;  %v2786_v26 = vadd.f32 %v2170_v24, %v2169_v22  ;;  %v2100_v27 = vpop.f32.mrb[6].mxu0  ;;  %v2172_v28 = vpop.f32.mrb[6].mxu1  ;;  %v449_v23 = vld [vmem:[#allocation2 + $0x20] sm:$0xff] }
 0x15c   : > { %v2101_v29 = vpop.f32.mrb[7].mxu0  ;;  %v2173_v30 = vpop.f32.mrb[7].mxu1 }
 0x15d   : > { %v2102_v31 = vadd.f32 %v2101_v29, %v2100_v27  ;;  %v2788_v32 = vadd.f32 %v2173_v30, %v2172_v28  ;;  %v452_v29 = vld [vmem:[#allocation2 + $0x38] sm:$0xff] }
 0x161   : > { %v2103_v33 = vpop.f32.mrb[8].mxu0  ;;  %v2175_v34 = vpop.f32.mrb[8].mxu1 }
 0x162   : > { %v2104_v35 = vpop.f32.mrb[9].mxu0  ;;  %v2176_v36 = vpop.f32.mrb[9].mxu1 }
 0x163   : > { %v2105_v37 = vadd.f32 %v2104_v35, %v2103_v33  ;;  %v2790_v38 = vadd.f32 %v2176_v36, %v2175_v34  ;;  %v2106_v39 = vpop.f32.mrb[10].mxu0  ;;  %v2178_v40 = vpop.f32.mrb[10].mxu1  ;;  %v450_v34 = vld [vmem:[#allocation2 + $0x28] sm:$0xff] }
 0x164   : > { %v2107_v41 = vpop.f32.mrb[11].mxu0  ;;  %v2179_v42 = vpop.f32.mrb[11].mxu1 }
 0x165   : > { %v2108_v43 = vadd.f32 %v2107_v41, %v2106_v39  ;;  %v2792_v44 = vadd.f32 %v2179_v42, %v2178_v40 }
 0x169   : > { %v2109_v45 = vpop.f32.mrb[12].mxu0  ;;  %v2181_v46 = vpop.f32.mrb[12].mxu1 }
 0x16a   : > { %v2110_v47 = vpop.f32.mrb[13].mxu0  ;;  %v2182_v48 = vpop.f32.mrb[13].mxu1 }
 0x16b   : > { %v2111_v49 = vadd.f32 %v2110_v47, %v2109_v45  ;;  %v2794_v50 = vadd.f32 %v2182_v48, %v2181_v46  ;;  %v2112_v51 = vpop.f32.mrb[14].mxu0  ;;  %v2184_v52 = vpop.f32.mrb[14].mxu1  ;;  %v455_v46 = vld [vmem:[#allocation2 + $0x50] sm:$0xff] }
 0x16c   : > { %v2113_v53 = vpop.f32.mrb[15].mxu0  ;;  %v2185_v54 = vpop.f32.mrb[15].mxu1 }
 0x16d   : > { %v2114_v55 = vadd.f32 %v2113_v53, %v2112_v51  ;;  %v2796_v56 = vadd.f32 %v2185_v54, %v2184_v52 }
 0x171   : > { %v2115_v57 = vpop.f32.mrb[16].mxu0  ;;  %v2229_v59 = vpop.f32.mrb[16].mxu1 }
 0x172   : > { %v1193_v60 = vadd.f32 %v2229_v59, %v2099_v25  ;;  %v2116_v61 = vpop.f32.mrb[17].mxu0  ;;  %v1184_v63 = vpop.f32.mrb[17].mxu1 }
 0x173   : > { %v2117_v0 = vadd.f32 %v2116_v61, %v2115_v57  ;;  %v1185_v1 = vadd.f32 %v2093_v13, %v1184_v63  ;;  %v2118_v2 = vpop.f32.mrb[18].mxu0  ;;  %v2230_v4 = vpop.f32.mrb[18].mxu1 }
 0x174   : > { %v1313_v5 = vadd.f32 %v1193_v60, %v447_v58  ;;  %v1196_v6 = vadd.f32 %v2230_v4, %v2102_v31  ;;  %v2119_v7 = vpop.f32.mrb[19].mxu0  ;;  %v1187_v9 = vpop.f32.mrb[19].mxu1  ;;  %v454_v60 = vld [vmem:[#allocation2 + $0x48] sm:$0xff] }
 0x175   : > { %v1311_v10 = vadd.f32 %v1185_v1, %v445_v62  ;;  %v2120_v11 = vadd.f32 %v2119_v7, %v2118_v2  ;;  %v1188_v12 = vadd.f32 %v2096_v19, %v1187_v9 }
 0x176   : > { %1345 = vst [vmem:[#allocation2 + $0x10] sm:$0xff] %v1313_v5  ;;  %v1314_v15 = vadd.f32 %v1196_v6, %v448_v3  ;;  %v457_v6 = vld [vmem:[#allocation2 + $0x60] sm:$0xff] }
 0x177   : > { %1343 = vst [vmem:[#allocation2] sm:$0xff] %v1311_v10  ;;  %v1312_v16 = vadd.f32 %v1188_v12, %v446_v8 }
 0x178   : > { %1346 = vst [vmem:[#allocation2 + $0x18] sm:$0xff] %v1314_v15  ;;  %v459_v15 = vld [vmem:[#allocation2 + $0x70] sm:$0xff] }
 0x179   : > { %1344 = vst [vmem:[#allocation2 + $0x8] sm:$0xff] %v1312_v16  ;;  %v2121_v17 = vpop.f32.mrb[20].mxu0  ;;  %v2233_v13 = vpop.f32.mrb[20].mxu1 }
 0x17a   : > { %v1209_v21 = vadd.f32 %v2233_v13, %v2111_v49  ;;  %v2122_v22 = vpop.f32.mrb[21].mxu0  ;;  %v1200_v24 = vpop.f32.mrb[21].mxu1  ;;  %v453_v49 = vld [vmem:[#allocation2 + $0x40] sm:$0xff] }
 0x17b   : > { %v2123_v25 = vadd.f32 %v2122_v22, %v2121_v17  ;;  %v1201_v27 = vadd.f32 %v2105_v37, %v1200_v24  ;;  %v2124_v28 = vpop.f32.mrb[22].mxu0  ;;  %v2234_v30 = vpop.f32.mrb[22].mxu1  ;;  %v458_v17 = vld [vmem:[#allocation2 + $0x68] sm:$0xff] }
 0x17c   : > { %v1317_v31 = vadd.f32 %v1209_v21, %v451_v18  ;;  %v1212_v19 = vadd.f32 %v2234_v30, %v2114_v55  ;;  %v2125_v33 = vpop.f32.mrb[23].mxu0  ;;  %v1203_v35 = vpop.f32.mrb[23].mxu1  ;;  %v456_v55 = vld [vmem:[#allocation2 + $0x58] sm:$0xff] }
 0x17d   : > { %v1315_v36 = vadd.f32 %v1201_v27, %v449_v23  ;;  %v2126_v39 = vadd.f32 %v2125_v33, %v2124_v28  ;;  %v1204_v40 = vadd.f32 %v2108_v43, %v1203_v35  ;;  %v460_v23 = vld [vmem:[#allocation2 + $0x78] sm:$0xff] }
 0x17e   : > { %1349 = vst [vmem:[#allocation2 + $0x30] sm:$0xff] %v1317_v31  ;;  %v1318_v41 = vadd.f32 %v1212_v19, %v452_v29 }
 0x17f   : > { %1347 = vst [vmem:[#allocation2 + $0x20] sm:$0xff] %v1315_v36  ;;  %v1316_v42 = vadd.f32 %v1204_v40, %v450_v34  ;;  %v461_v36 = vld [vmem:[#allocation2 + $0x80] sm:$0xff] }
 0x180   : > { %1350 = vst [vmem:[#allocation2 + $0x38] sm:$0xff] %v1318_v41 }
 0x181   : > { %1348 = vst [vmem:[#allocation2 + $0x28] sm:$0xff] %v1316_v42  ;;  %v2127_v45 = vpop.f32.mrb[24].mxu0  ;;  %v2237_v37 = vpop.f32.mrb[24].mxu1 }
 0x182   : > { %v1225_v47 = vadd.f32 %v2237_v37, %v2123_v25  ;;  %v2128_v48 = vpop.f32.mrb[25].mxu0  ;;  %v1216_v51 = vpop.f32.mrb[25].mxu1 }
 0x183   : > { %v2129_v52 = vadd.f32 %v2128_v48, %v2127_v45  ;;  %v1217_v53 = vadd.f32 %v2117_v0, %v1216_v51  ;;  %v2130_v54 = vpop.f32.mrb[26].mxu0  ;;  %v2238_v57 = vpop.f32.mrb[26].mxu1  ;;  %v462_v45 = vld [vmem:[#allocation2 + $0x88] sm:$0xff] }
 0x184   : > { %v1321_v58 = vadd.f32 %v1225_v47, %v455_v46  ;;  %v1228_v43 = vadd.f32 %v2238_v57, %v2126_v39  ;;  %v2131_v59 = vpop.f32.mrb[27].mxu0  ;;  %v1219_v61 = vpop.f32.mrb[27].mxu1  ;;  %v463_v57 = vld [vmem:[#allocation2 + $0x90] sm:$0xff] }
 0x185   : > { %v1319_v62 = vadd.f32 %v1217_v53, %v453_v49  ;;  %v2132_v63 = vadd.f32 %v2131_v59, %v2130_v54  ;;  %v1220_v1 = vadd.f32 %v2120_v11, %v1219_v61  ;;  %v464_v61 = vld [vmem:[#allocation2 + $0x98] sm:$0xff] }
 0x186   : > { %1353 = vst [vmem:[#allocation2 + $0x50] sm:$0xff] %v1321_v58  ;;  %v1322_v2 = vadd.f32 %v1228_v43, %v456_v55 }
 0x187   : > { %1351 = vst [vmem:[#allocation2 + $0x40] sm:$0xff] %v1319_v62  ;;  %v1320_v3 = vadd.f32 %v1220_v1, %v454_v60 }
 0x188   : > { %1354 = vst [vmem:[#allocation2 + $0x58] sm:$0xff] %v1322_v2 }
 0x189   : > { %1352 = vst [vmem:[#allocation2 + $0x48] sm:$0xff] %v1320_v3  ;;  %v2133_v4 = vpop.f32.mrb[28].mxu0  ;;  %v2241_v5 = vpop.f32.mrb[28].mxu1  ;;  %v471_v3 = vld [vmem:[#allocation2 + $0xd0] sm:$0xff] }
 0x18a   : > { %v2134_v0 = vpop.f32.mrb[29].mxu0  ;;  %v1232_v7 = vpop.f32.mrb[29].mxu1 }
 0x18b   : > { %v2135_v8 = vadd.f32 %v2134_v0, %v2133_v4  ;;  %v1233_v9 = vadd.f32 %v2129_v52, %v1232_v7  ;;  %v2136_v10 = vpop.f32.mrb[30].mxu0  ;;  %v2242_v12 = vpop.f32.mrb[30].mxu1 }
 0x18c   : > { %v2137_v16 = vpop.f32.mrb[31].mxu0  ;;  %v1235_v18 = vpop.f32.mrb[31].mxu1 }
 0x18d   : > { %v1241_v11 = vadd.f32 %v2241_v5, %v2135_v8  ;;  %v1323_v13 = vadd.f32 %v1233_v9, %v457_v6  ;;  %v2138_v21 = vadd.f32 %v2137_v16, %v2136_v10  ;;  %v1236_v22 = vadd.f32 %v2132_v63, %v1235_v18  ;;  %v469_v6 = vld [vmem:[#allocation2 + $0xc0] sm:$0xff] }
 0x18f   : > { %v1325_v24 = vadd.f32 %v1241_v11, %v459_v15  ;;  %1355 = vst [vmem:[#allocation2 + $0x60] sm:$0xff] %v1323_v13  ;;  %v1244_v25 = vadd.f32 %v2242_v12, %v2138_v21  ;;  %v1324_v27 = vadd.f32 %v1236_v22, %v458_v17  ;;  %v472_v12 = vld [vmem:[#allocation2 + $0xd8] sm:$0xff]  ;;  %v465_v17 = vld [vmem:[#allocation2 + $0xa0] sm:$0xff]  ;;  %v470_v13 = vld [vmem:[#allocation2 + $0xc8] sm:$0xff] }
 0x191   : > { %1357 = vst [vmem:[#allocation2 + $0x70] sm:$0xff] %v1325_v24  ;;  %v1326_v28 = vadd.f32 %v1244_v25, %v460_v23  ;;  %1356 = vst [vmem:[#allocation2 + $0x68] sm:$0xff] %v1324_v27  ;;  %v2139_v29 = vpop.f32.mrb[32].mxu0  ;;  %v2245_v30 = vpop.f32.mrb[32].mxu1  ;;  %v466_v27 = vld [vmem:[#allocation2 + $0xa8] sm:$0xff] }
 0x192   : > { %v2140_v31 = vpop.f32.mrb[33].mxu0  ;;  %v1248_v19 = vpop.f32.mrb[33].mxu1 }
 0x193   : > { %1358 = vst [vmem:[#allocation2 + $0x78] sm:$0xff] %v1326_v28  ;;  %v2141_v33 = vadd.f32 %v2140_v31, %v2139_v29  ;;  %v2142_v34 = vpop.f32.mrb[34].mxu0  ;;  %v2246_v35 = vpop.f32.mrb[34].mxu1  ;;  %v475_v31 = vld [vmem:[#allocation2 + $0xf0] sm:$0xff] }
 0x194   : > { %v2143_v39 = vpop.f32.mrb[35].mxu0  ;;  %v1251_v40 = vpop.f32.mrb[35].mxu1 }
 0x195   : > { %v1249_v41 = vadd.f32 %v2141_v33, %v1248_v19  ;;  %v2144_v42 = vadd.f32 %v2143_v39, %v2142_v34 }
 0x197   : > { %v1327_v46 = vadd.f32 %v1249_v41, %v461_v36  ;;  %v1252_v37 = vadd.f32 %v2144_v42, %v1251_v40  ;;  %v476_v41 = vld [vmem:[#allocation2 + $0xf8] sm:$0xff] }
 0x199   : > { %1359 = vst [vmem:[#allocation2 + $0x80] sm:$0xff] %v1327_v46  ;;  %v1328_v47 = vadd.f32 %v1252_v37, %v462_v45  ;;  %v2145_v48 = vpop.f32.mrb[36].mxu0  ;;  %v2798_v49 = vpop.f32.mrb[36].mxu1  ;;  %v467_v46 = vld [vmem:[#allocation2 + $0xb0] sm:$0xff] }
 0x19a   : > { %v2146_v51 = vpop.f32.mrb[37].mxu0  ;;  %v1264_v52 = vpop.f32.mrb[37].mxu1 }
 0x19b   : > { %1360 = vst [vmem:[#allocation2 + $0x88] sm:$0xff] %v1328_v47  ;;  %v2147_v53 = vadd.f32 %v2146_v51, %v2145_v48  ;;  %v2148_v54 = vpop.f32.mrb[38].mxu0  ;;  %v2800_v55 = vpop.f32.mrb[38].mxu1  ;;  %v474_v48 = vld [vmem:[#allocation2 + $0xe8] sm:$0xff] }
 0x19c   : > { %v2149_v58 = vpop.f32.mrb[39].mxu0  ;;  %v1267_v43 = vpop.f32.mrb[39].mxu1 }
 0x19d   : > { %v1257_v59 = vadd.f32 %v2245_v30, %v2147_v53  ;;  %v2150_v60 = vadd.f32 %v2149_v58, %v2148_v54  ;;  %v468_v58 = vld [vmem:[#allocation2 + $0xb8] sm:$0xff] }
 0x19f   : > { %v1329_v62 = vadd.f32 %v1257_v59, %v463_v57  ;;  %v1260_v63 = vadd.f32 %v2246_v35, %v2150_v60  ;;  %v473_v35 = vld [vmem:[#allocation2 + $0xe0] sm:$0xff]  ;;  %v1380_v60 = vld [vmem:[#allocation2 + $0x8] sm:$0xff] (!%p1912_p13) }
 0x1a1   : > { %1361 = vst [vmem:[#allocation2 + $0x90] sm:$0xff] %v1329_v62  ;;  %v1330_v1 = vadd.f32 %v1260_v63, %v464_v61  ;;  %v2151_v2 = vpop.f32.mrb[40].mxu0  ;;  %v2253_v4 = vpop.f32.mrb[40].mxu1  ;;  %v1381_v62 = vld [vmem:[#allocation2 + $0x10] sm:$0xff] (!%p1912_p13)  ;;  %v1382_v63 = vld [vmem:[#allocation2 + $0x18] sm:$0xff] (!%p1912_p13) }
 0x1a2   : > { %v1289_v5 = vadd.f32 %v2253_v4, %v2786_v26  ;;  %v2152_v0 = vpop.f32.mrb[41].mxu0  ;;  %v1280_v7 = vpop.f32.mrb[41].mxu1  ;;  %v1384_v4 = vld [vmem:[#allocation2 + $0x28] sm:$0xff] (!%p1912_p13) }
 0x1a3   : > { %1362 = vst [vmem:[#allocation2 + $0x98] sm:$0xff] %v1330_v1  ;;  %v2153_v8 = vadd.f32 %v2152_v0, %v2151_v2  ;;  %v1281_v9 = vadd.f32 %v2782_v14, %v1280_v7  ;;  %v2154_v10 = vpop.f32.mrb[42].mxu0  ;;  %v2254_v15 = vpop.f32.mrb[42].mxu1  ;;  %v1383_v1 = vld [vmem:[#allocation2 + $0x20] sm:$0xff] (!%p1912_p13)  ;;  %v1385_v0 = vld [vmem:[#allocation2 + $0x30] sm:$0xff] (!%p1912_p13) }
 0x1a4   : > { %v1337_v16 = vadd.f32 %v1289_v5, %v471_v3  ;;  %v1292_v18 = vadd.f32 %v2254_v15, %v2788_v32  ;;  %v2155_v11 = vpop.f32.mrb[43].mxu0  ;;  %v1283_v21 = vpop.f32.mrb[43].mxu1  ;;  %v1388_v15 = vld [vmem:[#allocation2 + $0x48] sm:$0xff] (!%p1912_p13) }
 0x1a5   : > { %v1265_v22 = vadd.f32 %v2153_v8, %v1264_v52  ;;  %v1335_v23 = vadd.f32 %v1281_v9, %v469_v6  ;;  %v2156_v26 = vadd.f32 %v2155_v11, %v2154_v10  ;;  %v1284_v24 = vadd.f32 %v2784_v20, %v1283_v21  ;;  %v1386_v6 = vld [vmem:[#allocation2 + $0x38] sm:$0xff] (!%p1912_p13) }
 0x1a6   : > { %1369 = vst [vmem:[#allocation2 + $0xd0] sm:$0xff] %v1337_v16  ;;  %v1338_v25 = vadd.f32 %v1292_v18, %v472_v12  ;;  %v1387_v12 = vld [vmem:[#allocation2 + $0x40] sm:$0xff] (!%p1912_p13)  ;;  %v1389_v16 = vld [vmem:[#allocation2 + $0x50] sm:$0xff] (!%p1912_p13)  ;;  %v1390_v21 = vld [vmem:[#allocation2 + $0x58] sm:$0xff] (!%p1912_p13) }
 0x1a7   : > { %v1331_v28 = vadd.f32 %v1265_v22, %v465_v17  ;;  %1367 = vst [vmem:[#allocation2 + $0xc0] sm:$0xff] %v1335_v23  ;;  %v1268_v14 = vadd.f32 %v2156_v26, %v1267_v43  ;;  %v1336_v29 = vadd.f32 %v1284_v24, %v470_v13  ;;  %v1391_v22 = vld [vmem:[#allocation2 + $0x60] sm:$0xff] (!%p1912_p13) }
 0x1a8   : > { %1370 = vst [vmem:[#allocation2 + $0xd8] sm:$0xff] %v1338_v25 }
 0x1a9   : > { %1363 = vst [vmem:[#allocation2 + $0xa0] sm:$0xff] %v1331_v28  ;;  %v1332_v30 = vadd.f32 %v1268_v14, %v466_v27  ;;  %1368 = vst [vmem:[#allocation2 + $0xc8] sm:$0xff] %v1336_v29  ;;  %v2157_v32 = vpop.f32.mrb[44].mxu0  ;;  %v2257_v19 = vpop.f32.mrb[44].mxu1  ;;  %v1392_v27 = vld [vmem:[#allocation2 + $0x68] sm:$0xff] (!%p1912_p13) }
 0x1aa   : > { %v1305_v33 = vadd.f32 %v2257_v19, %v2794_v50  ;;  %v2158_v34 = vpop.f32.mrb[45].mxu0  ;;  %v1296_v36 = vpop.f32.mrb[45].mxu1 }
 0x1ab   : > { %1364 = vst [vmem:[#allocation2 + $0xa8] sm:$0xff] %v1332_v30  ;;  %v2159_v20 = vadd.f32 %v2158_v34, %v2157_v32  ;;  %v1297_v39 = vadd.f32 %v2790_v38, %v1296_v36  ;;  %v2160_v40 = vpop.f32.mrb[46].mxu0  ;;  %v2258_v42 = vpop.f32.mrb[46].mxu1  ;;  %v1393_v32 = vld [vmem:[#allocation2 + $0x70] sm:$0xff] (!%p1912_p13)  ;;  %v1395_v36 = vld [vmem:[#allocation2 + $0x80] sm:$0xff] (!%p1912_p13) }
 0x1ac   : > { %v1341_v45 = vadd.f32 %v1305_v33, %v475_v31  ;;  %v1308_v37 = vadd.f32 %v2258_v42, %v2796_v56  ;;  %v2161_v47 = vpop.f32.mrb[47].mxu0  ;;  %v1299_v51 = vpop.f32.mrb[47].mxu1  ;;  %v1394_v31 = vld [vmem:[#allocation2 + $0x78] sm:$0xff] (!%p1912_p13) }
 0x1ad   : > { %v1273_v52 = vadd.f32 %v2798_v49, %v2159_v20  ;;  %v1339_v50 = vadd.f32 %v1297_v39, %v473_v35  ;;  %v2162_v53 = vadd.f32 %v2161_v47, %v2160_v40  ;;  %v1300_v54 = vadd.f32 %v2792_v44, %v1299_v51  ;;  %1378 = sbr.rel (%p1912_p13) target bundleno = 456 (0x1c8), region = 66  ;;  %v1379_v49 = vld [vmem:[#allocation2] sm:$0xff] (!%p1912_p13)  ;;  %v1396_v20 = vld [vmem:[#allocation2 + $0x88] sm:$0xff] (!%p1912_p13)  ;;  %v1398_v51 = vld [vmem:[#allocation2 + $0x98] sm:$0xff] (!%p1912_p13) }
 0x1ae   : > { %1373 = vst [vmem:[#allocation2 + $0xf0] sm:$0xff] %v1341_v45  ;;  %v1342_v57 = vadd.f32 %v1308_v37, %v476_v41  ;;  %v2816_v44 = vld [vmem:[%s2889_s2] ss:$0 sm:$0xff] (!%p1912_p13)  ;;  %v1397_v45 = vld [vmem:[#allocation2 + $0x90] sm:$0xff] (!%p1912_p13) }
 0x1af   : > { %v1333_v38 = vadd.f32 %v1273_v52, %v467_v46  ;;  %1371 = vst [vmem:[#allocation2 + $0xe0] sm:$0xff] %v1339_v50  ;;  %v1276_v43 = vadd.f32 %v2800_v55, %v2162_v53  ;;  %v1340_v59 = vadd.f32 %v1300_v54, %v474_v48  ;;  %v1418_v61 = vadd.f32 (!%p1912_p13), %v2816_v44, %v1379_v49 }
 0x1b0   : > { %1374 = vst [vmem:[#allocation2 + $0xf8] sm:$0xff] %v1342_v57  ;;  %v1419_v55 = vadd.f32 (!%p1912_p13), %v2816_v44, %v1380_v60  ;;  %v1420_v2 = vadd.f32 (!%p1912_p13), %v2816_v44, %v1381_v62  ;;  %v1421_v3 = vadd.f32 (!%p1912_p13), %v2816_v44, %v1382_v63  ;;  %v1422_v5 = vadd.f32 (!%p1912_p13), %v2816_v44, %v1383_v1  ;;  %v1399_v57 = vld [vmem:[#allocation2 + $0xa0] sm:$0xff] (!%p1912_p13) }
 0x1b1   : > { %1365 = vst [vmem:[#allocation2 + $0xb0] sm:$0xff] %v1333_v38  ;;  %v1334_v56 = vadd.f32 %v1276_v43, %v468_v58  ;;  %1372 = vst [vmem:[#allocation2 + $0xe8] sm:$0xff] %v1340_v59  ;;  %v1450_v7 = vmax.f32 (!%p1912_p13), %v1418_v61, 0.0  ;;  %v1423_v9 = vadd.f32 (!%p1912_p13), %v2816_v44, %v1384_v4  ;;  %v1424_v10 = vadd.f32 (!%p1912_p13), %v2816_v44, %v1385_v0  ;;  %v1403_v1 = vld [vmem:[#allocation2 + $0xc0] sm:$0xff] (!%p1912_p13) }
 0x1b2   : > { %v1451_v8 = vmax.f32 (!%p1912_p13), %v1419_v55, 0.0  ;;  %v1452_v17 = vmax.f32 (!%p1912_p13), %v1420_v2, 0.0  ;;  %v1453_v18 = vmax.f32 (!%p1912_p13), %v1421_v3, 0.0  ;;  %v1454_v11 = vmax.f32 (!%p1912_p13), %v1422_v5, 0.0  ;;  %v1400_v58 = vld [vmem:[#allocation2 + $0xa8] sm:$0xff] (!%p1912_p13) }
 0x1b3   : > { %1366 = vst [vmem:[#allocation2 + $0xb8] sm:$0xff] %v1334_v56  ;;  %v1425_v13 = vadd.f32 (!%p1912_p13), %v2816_v44, %v1386_v6  ;;  %v1455_v26 = vmax.f32 (!%p1912_p13), %v1423_v9, 0.0  ;;  %v1456_v24 = vmax.f32 (!%p1912_p13), %v1424_v10, 0.0  ;;  %v1426_v25 = vadd.f32 (!%p1912_p13), %v2816_v44, %v1387_v12  ;;  %v1404_v2 = vld [vmem:[#allocation2 + $0xc8] sm:$0xff] (!%p1912_p13)  ;;  %v1405_v6 = vld [vmem:[#allocation2 + $0xd0] sm:$0xff] (!%p1912_p13)  ;;  %v1406_v12 = vld [vmem:[#allocation2 + $0xd8] sm:$0xff] (!%p1912_p13) }
 0x1b4   : > { %v1983_v23 = vpack.c.bf16 %v1451_v8, %v1450_v7  ;;  %v1988_v28 = vpack.c.bf16 %v1453_v18, %v1452_v17  ;;  %v1427_v29 = vadd.f32 %v2816_v44, %v1388_v15  ;;  %v1428_v30 = vadd.f32 %v2816_v44, %v1389_v16 }
 0x1b5   : > { %v1457_v14 = vmax.f32 %v1425_v13, 0.0  ;;  %v1993_v19 = vpack.c.bf16 %v1455_v26, %v1454_v11  ;;  %v1458_v33 = vmax.f32 %v1426_v25, 0.0  ;;  %v1429_v34 = vadd.f32 %v2816_v44, %v1390_v21 }
 0x1b6   : > { %1984 = vst [vmem:[%s2705_s30] sm:$0xff] %v1983_v23   ;;  %v1430_v35 = vadd.f32 %v2816_v44, %v1391_v22  ;;  %2060 = vst [vmem:[%s2705_s30 + $0x8] sm:$0xff] %v1988_v28   ;;  %v1459_v40 = vmax.f32 %v1427_v29, 0.0  ;;  %v1460_v41 = vmax.f32 %v1428_v30, 0.0  ;;  %v1431_v42 = vadd.f32 %v2816_v44, %v1392_v27  ;;  %v1407_v11 = vld [vmem:[#allocation2 + $0xe0] sm:$0xff] }
 0x1b7   : > { %v1998_v39 = vpack.c.bf16 %v1457_v14, %v1456_v24  ;;  %2061 = vst [vmem:[%s2705_s30 + $0x10] sm:$0xff] %v1993_v19   ;;  %v1461_v46 = vmax.f32 %v1429_v34, 0.0  ;;  %v1432_v47 = vadd.f32 %v2816_v44, %v1393_v32  ;;  %v1433_v48 = vadd.f32 %v2816_v44, %v1394_v31  ;;  %v1409_v24 = vld [vmem:[#allocation2 + $0xf0] sm:$0xff]  ;;  %v1410_v25 = vld [vmem:[#allocation2 + $0xf8] sm:$0xff] }
 0x1b8   : > { %v1462_v37 = vmax.f32 %v1430_v35, 0.0  ;;  %v2003_v52 = vpack.c.bf16 %v1459_v40, %v1458_v33  ;;  %v1463_v50 = vmax.f32 %v1431_v42, 0.0  ;;  %v1434_v53 = vadd.f32 %v2816_v44, %v1395_v36  ;;  %v1401_v49 = vld [vmem:[#allocation2 + $0xb0] sm:$0xff]  ;;  %v1408_v13 = vld [vmem:[#allocation2 + $0xe8] sm:$0xff] }
 0x1b9   : > { %2062 = vst [vmem:[%s2705_s30 + $0x18] sm:$0xff] %v1998_v39   ;;  %v1435_v54 = vadd.f32 %v2816_v44, %v1396_v20  ;;  %v2008_v38 = vpack.c.bf16 %v1461_v46, %v1460_v41  ;;  %v1464_v43 = vmax.f32 %v1432_v47, 0.0  ;;  %v1465_v59 = vmax.f32 %v1433_v48, 0.0 }
 0x1ba   : > { %v1436_v56 = vadd.f32 %v2816_v44, %v1397_v45  ;;  %v1402_v60 = vld [vmem:[#allocation2 + $0xb8] sm:$0xff]  ;;  %2063 = vst [vmem:[%s2705_s30 + $0x20] sm:$0xff] %v2003_v52   ;;  %v2013_v61 = vpack.c.bf16 %v1463_v50, %v1462_v37  ;;  %v1466_v55 = vmax.f32 %v1434_v53, 0.0  ;;  %v1437_v63 = vadd.f32 %v2816_v44, %v1398_v51 }
 0x1bb   : > { %v1467_v62 = vmax.f32 %v1435_v54, 0.0  ;;  %2064 = vst [vmem:[%s2705_s30 + $0x28] sm:$0xff] %v2008_v38   ;;  %v2018_v3 = vpack.c.bf16 %v1465_v59, %v1464_v43  ;;  %v1438_v5 = vadd.f32 %v2816_v44, %v1399_v57  ;;  %v1439_v0 = vadd.f32 %v2816_v44, %v1400_v58 }
 0x1bc   : > { %v1468_v4 = vmax.f32 %v1436_v56, 0.0  ;;  %2065 = vst [vmem:[%s2705_s30 + $0x30] sm:$0xff] %v2013_v61   ;;  %v1469_v8 = vmax.f32 %v1437_v63, 0.0  ;;  %v1440_v9 = vadd.f32 %v2816_v44, %v1401_v49  ;;  %v1441_v10 = vadd.f32 %v2816_v44, %v1402_v60 }
 0x1bd   : > { %v2023_v7 = vpack.c.bf16 %v1467_v62, %v1466_v55  ;;  %2066 = vst [vmem:[%s2705_s30 + $0x38] sm:$0xff] %v2018_v3   ;;  %v1470_v15 = vmax.f32 %v1438_v5, 0.0  ;;  %v1471_v16 = vmax.f32 %v1439_v0, 0.0  ;;  %v1442_v17 = vadd.f32 %v2816_v44, %v1403_v1 }
 0x1be   : > { %v1443_v18 = vadd.f32 %v2816_v44, %v1404_v2  ;;  %v2028_v21 = vpack.c.bf16 %v1469_v8, %v1468_v4  ;;  %v1472_v22 = vmax.f32 %v1440_v9, 0.0  ;;  %v1473_v23 = vmax.f32 %v1441_v10, 0.0 }
 0x1bf   : > { %2067 = vst [vmem:[%s2705_s30 + $0x40] sm:$0xff] %v2023_v7   ;;  %v1444_v26 = vadd.f32 %v2816_v44, %v1405_v6  ;;  %v2033_v27 = vpack.c.bf16 %v1471_v16, %v1470_v15  ;;  %v1474_v28 = vmax.f32 %v1442_v17, 0.0  ;;  %v1445_v29 = vadd.f32 %v2816_v44, %v1406_v12 }
 0x1c0   : > { %v1475_v14 = vmax.f32 %v1443_v18, 0.0  ;;  %2068 = vst [vmem:[%s2705_s30 + $0x48] sm:$0xff] %v2028_v21   ;;  %v2038_v30 = vpack.c.bf16 %v1473_v23, %v1472_v22  ;;  %v1446_v31 = vadd.f32 %v2816_v44, %v1407_v11  ;;  %v1447_v19 = vadd.f32 %v2816_v44, %v1408_v13 }
 0x1c1   : > { %v1476_v32 = vmax.f32 %v1444_v26, 0.0  ;;  %2069 = vst [vmem:[%s2705_s30 + $0x50] sm:$0xff] %v2033_v27   ;;  %v1477_v34 = vmax.f32 %v1445_v29, 0.0  ;;  %v1448_v35 = vadd.f32 %v2816_v44, %v1409_v24  ;;  %v1449_v36 = vadd.f32 %v2816_v44, %v1410_v25 }
 0x1c2   : > { %v2043_v33 = vpack.c.bf16 %v1475_v14, %v1474_v28  ;;  %2070 = vst [vmem:[%s2705_s30 + $0x58] sm:$0xff] %v2038_v30   ;;  %v1478_v20 = vmax.f32 %v1446_v31, 0.0  ;;  %v1479_v39 = vmax.f32 %v1447_v19, 0.0 }
 0x1c3   : > { %v2048_v40 = vpack.c.bf16 %v1477_v34, %v1476_v32  ;;  %v1480_v41 = vmax.f32 %v1448_v35, 0.0  ;;  %v1481_v42 = vmax.f32 %v1449_v36, 0.0 }
 0x1c4   : > { %2071 = vst [vmem:[%s2705_s30 + $0x60] sm:$0xff] %v2043_v33   ;;  %v2053_v45 = vpack.c.bf16 %v1479_v39, %v1478_v20 }
 0x1c5   : > { %2072 = vst [vmem:[%s2705_s30 + $0x68] sm:$0xff] %v2048_v40   ;;  %v2058_v46 = vpack.c.bf16 %v1481_v42, %v1480_v41 }
 0x1c6   : > { %2073 = vst [vmem:[%s2705_s30 + $0x70] sm:$0xff] %v2053_v45  }
 0x1c7   : > { %2074 = vst [vmem:[%s2705_s30 + $0x78] sm:$0xff] %v2058_v46  }
 0x1c8 PF: > { %s13_s18 = sadd.s32 1, %s2477_s18   ;;  %s2891_s12 = smov %s2457_s13 }
 0x1c9   : > { %p10_p0 = scmp.ge.s32.totalorder %s13_s18, 8   ;;  %s2892_s13 = smov %s2551_s25 }
 0x1ca   : > { %s2893_s14 = smov %s2469_s16  ;;  %s2894_s15 = smov %s2473_s17 }
 0x1cb   : > { %s2895_s16 = smov %s2898_s19  ;;  %s2896_s17 = smov %s2902_s20 }
 0x1cc   :  { %12 = sbr.rel (!%p10_p0) target bundleno = 4 (0x4), region = 113 }

// kernel: bottleneck_forward.7
= control target key start
LH: loop header
LB: loop body
LE: loop exit
PB: predicated region body
PF: predicated region fallthrough
CT: control target
= control target key end

     0   :  { %s1359_s15 = smov 0   ;;  %s1361_s16 = smov 0   ;;  %s1546_s0 = inlined_call_operand.vmem [shape: bf16[512,128], index: 0, kind: input, shape index: {}]   ;;  %s1547_s1 = inlined_call_operand.vmem [shape: bf16[128,128], index: 1, kind: input, shape index: {}]   ;;  %s1548_s2 = inlined_call_operand.vmem [shape: f32[1,128], index: 2, kind: input, shape index: {}]   ;;  %s1549_s3 = inlined_call_operand.vmem [shape: f32[512,128], index: 3, kind: input, shape index: {}]   ;;  %s1550_s4 = inlined_call_operand.vmem [shape: f32[512,128], index: 4, kind: output, shape index: {}]  }
   0x1   :  { %s1363_s17 = smov 0  }
   0x2 LB: > { %s33_s18 = sadd.s32 1, %s1328_s16  ;;  %p1139_p0 = scmp.ge.s32.totalorder %s1332_s17, 1  ;;  %s1332_s17 = sphi %s1363_s17, %s14_s17   ;;  %s1328_s16 = sphi %s1361_s16, %s1552_s16   ;;  %s1324_s15 = sphi %s1359_s15, %s1551_s15  }
   0x3   : > { %p35_p1 = scmp.ge.s32.totalorder %s33_s18, 2  ;;  %p229_p2 = scmp.lt.s32.totalorder %s1332_s17, 3 }
   0x5   : > { %s1554_s18 = smov (%p35_p1, %s33_s18), 0  ;;  %p230_p3 = pnand %p1139_p0, %p229_p2 }
   0x6   : > { %v1286_v0 = vld [vmem:[%s1547_s1] sm:$0xff] (!%p230_p3)   ;;  %s1140_s21 = sshll.u32 (!%p230_p3), %s1324_s15, 5  ;;  %v1287_v1 = vld [vmem:[%s1547_s1 + $0x8] sm:$0xff] (!%p230_p3)   ;;  %v1288_v2 = vld [vmem:[%s1547_s1 + $0x10] sm:$0xff] (!%p230_p3)  }
   0x7   : > { %233 = sbr.rel (%p230_p3) target bundleno = 285 (0x11d), region = 36  ;;  %p281_p4 = scmp.lt.s32.totalorder (!%p230_p3), %s1140_s21, 63  ;;  %1197 = vmatprep.subr.bf16.mxu0 (!%p230_p3), %v1286_v0  ;;  %1245 = vmatprep.subr.bf16.mxu1 (!%p230_p3), %v1286_v0  ;;  %v1289_v3 = vld [vmem:[%s1547_s1 + $0x18] sm:$0xff] (!%p230_p3)   ;;  %v1290_v6 = vld [vmem:[%s1547_s1 + $0x20] sm:$0xff] (!%p230_p3)   ;;  %v1291_v7 = vld [vmem:[%s1547_s1 + $0x28] sm:$0xff] (!%p230_p3)  }
   0x8   : > { %1198 = vmatpush3.bf16.msra.mxu0 (!%p230_p3), %v1286_v0  ;;  %1253 = vmatpush3.bf16.msra.mxu1 (!%p230_p3), %v1286_v0  ;;  %v1292_v8 = vld [vmem:[%s1547_s1 + $0x30] sm:$0xff] (!%p230_p3)   ;;  %v1293_v9 = vld [vmem:[%s1547_s1 + $0x38] sm:$0xff] (!%p230_p3)   ;;  %v1434_v25 = vld [vmem:[%s1548_s2] ss:$0 sm:$0xff] (!%p230_p3) }
   0x9   : > { %1199 = vmatprep.subr.bf16.mxu0 (!%p230_p3), %v1287_v1  ;;  %1246 = vmatprep.subr.bf16.mxu1 (!%p230_p3), %v1287_v1 }
   0xc   : > { %1200 = vmatpush3.bf16.msra.mxu0 (!%p230_p3), %v1287_v1  ;;  %1254 = vmatpush3.bf16.msra.mxu1 (!%p230_p3), %v1287_v1 }
   0xd   : > { %1201 = vmatprep.subr.bf16.mxu0 (!%p230_p3), %v1288_v2  ;;  %1247 = vmatprep.subr.bf16.mxu1 (!%p230_p3), %v1288_v2 }
   0xe   : > { %s1556_s21 = smov (!%p281_p4, %s1140_s21), 63 }
   0xf   : > { %s1141_s26 = sshll.u32 %s1556_s21, 2  ;;  %s1143_s14 = sshll.u32 %s1556_s21, 3 }
  0x10   : > { %s1392_s29 = scalar_lea.vmem %s1546_s0, %s1141_s26  ;;  %1202 = vmatpush3.bf16.msra.mxu0 %v1288_v2  ;;  %1255 = vmatpush3.bf16.msra.mxu1 %v1288_v2  ;;  %s1429_s20 = scalar_lea.vmem %s1549_s3, %s1143_s14 }
  0x11   : > { %v1294_v4 = vld [vmem:[%s1392_s29] sm:$0xff]   ;;  %1203 = vmatprep.subr.bf16.mxu0 %v1289_v3  ;;  %1248 = vmatprep.subr.bf16.mxu1 %v1289_v3  ;;  %v1296_v10 = vld [vmem:[%s1392_s29 + $0x8] sm:$0xff]   ;;  %v1298_v12 = vld [vmem:[%s1392_s29 + $0x10] sm:$0xff]   ;;  %s1453_s25 = scalar_lea.vmem %s1550_s4, %s1143_s14 }
  0x12   : > { %v1295_v5 = vld [vmem:[%s1392_s29 + $0x40] sm:$0xff]   ;;  %1213 = vmatprep.mubr.bf16.mxu0 %v1294_v4  ;;  %v1297_v11 = vld [vmem:[%s1392_s29 + $0x48] sm:$0xff]   ;;  %v1299_v13 = vld [vmem:[%s1392_s29 + $0x50] sm:$0xff]  }
  0x13   : > { %1229 = vmatprep.mubr.bf16.mxu1 %v1295_v5  ;;  %v1300_v14 = vld [vmem:[%s1392_s29 + $0x18] sm:$0xff]   ;;  %v1302_v16 = vld [vmem:[%s1392_s29 + $0x20] sm:$0xff]   ;;  %v1304_v18 = vld [vmem:[%s1392_s29 + $0x28] sm:$0xff]  }
  0x14   : > { %1204 = vmatpush3.bf16.msra.mxu0 %v1289_v3  ;;  %1256 = vmatpush3.bf16.msra.mxu1 %v1289_v3  ;;  %v1301_v15 = vld [vmem:[%s1392_s29 + $0x58] sm:$0xff]   ;;  %v1303_v17 = vld [vmem:[%s1392_s29 + $0x60] sm:$0xff]   ;;  %v1305_v19 = vld [vmem:[%s1392_s29 + $0x68] sm:$0xff]  }
  0x15   : > { %1205 = vmatprep.subr.bf16.mxu0 %v1290_v6  ;;  %1249 = vmatprep.subr.bf16.mxu1 %v1290_v6  ;;  %v1306_v20 = vld [vmem:[%s1392_s29 + $0x30] sm:$0xff]   ;;  %v1308_v22 = vld [vmem:[%s1392_s29 + $0x38] sm:$0xff]   ;;  %v879_v35 = vld [vmem:[%s1429_s20] sm:$0xff] }
  0x16   : > { %v1307_v21 = vld [vmem:[%s1392_s29 + $0x70] sm:$0xff]   ;;  %v1309_v23 = vld [vmem:[%s1392_s29 + $0x78] sm:$0xff]   ;;  %v895_v36 = vld [vmem:[%s1429_s20 + $0x80] sm:$0xff] }
  0x17   : > { %v881_v29 = vld [vmem:[%s1429_s20 + $0x10] sm:$0xff]  ;;  %v882_v41 = vld [vmem:[%s1429_s20 + $0x18] sm:$0xff]  ;;  %v880_v47 = vld [vmem:[%s1429_s20 + $0x8] sm:$0xff] }
  0x18   : > { %1206 = vmatpush3.bf16.msra.mxu0 %v1290_v6  ;;  %1257 = vmatpush3.bf16.msra.mxu1 %v1290_v6  ;;  %v897_v30 = vld [vmem:[%s1429_s20 + $0x90] sm:$0xff]  ;;  %v898_v42 = vld [vmem:[%s1429_s20 + $0x98] sm:$0xff]  ;;  %v896_v48 = vld [vmem:[%s1429_s20 + $0x88] sm:$0xff] }
  0x19   : > { %1207 = vmatprep.subr.bf16.mxu0 %v1291_v7  ;;  %1250 = vmatprep.subr.bf16.mxu1 %v1291_v7  ;;  %v885_v5 = vld [vmem:[%s1429_s20 + $0x30] sm:$0xff] }
  0x1a   : > { %v901_v6 = vld [vmem:[%s1429_s20 + $0xb0] sm:$0xff] }
  0x1c   : > { %1208 = vmatpush3.bf16.msra.mxu0 %v1291_v7  ;;  %1258 = vmatpush3.bf16.msra.mxu1 %v1291_v7 }
  0x1d   : > { %1209 = vmatprep.subr.bf16.mxu0 %v1292_v8  ;;  %1251 = vmatprep.subr.bf16.mxu1 %v1292_v8 }
  0x20   : > { %1210 = vmatpush3.bf16.msra.mxu0 %v1292_v8  ;;  %1259 = vmatpush3.bf16.msra.mxu1 %v1292_v8 }
  0x21   : > { %1211 = vmatprep.subr.bf16.mxu0 %v1293_v9  ;;  %1252 = vmatprep.subr.bf16.mxu1 %v1293_v9 }
  0x24   : > { %1212 = vmatpush3.bf16.msra.mxu0 %v1293_v9  ;;  %1260 = vmatpush3.bf16.msra.mxu1 %v1293_v9 }
  0x27   : > { %1214 = vmatmul.mubr.bf16.vlgmr.msra.gmra.mrb[0].mxu0 %v1296_v10  ;;  %1230 = vmatmul.mubr.bf16.vlgmr.msra.gmra.mrb[0].mxu1 %v1297_v11  ;;  %v883_v11 = vld [vmem:[%s1429_s20 + $0x20] sm:$0xff] }
  0x28   : > { %1217 = vmatprep.mubr.bf16.mxu0 %v1298_v12  ;;  %1233 = vmatprep.mubr.bf16.mxu1 %v1299_v13  ;;  %v899_v12 = vld [vmem:[%s1429_s20 + $0xa0] sm:$0xff] }
  0x2f   : > { %1218 = vmatmul.mubr.bf16.gmra.mrb[4].mxu0 %v1300_v14  ;;  %1234 = vmatmul.mubr.bf16.gmra.mrb[4].mxu1 %v1301_v15 }
  0x30   : > { %1221 = vmatprep.mubr.bf16.mxu0 %v1302_v16  ;;  %1237 = vmatprep.mubr.bf16.mxu1 %v1303_v17  ;;  %v886_v17 = vld [vmem:[%s1429_s20 + $0x38] sm:$0xff] }
  0x37   : > { %1222 = vmatmul.mubr.bf16.gmra.mrb[8].mxu0 %v1304_v18  ;;  %1238 = vmatmul.mubr.bf16.gmra.mrb[8].mxu1 %v1305_v19  ;;  %v902_v18 = vld [vmem:[%s1429_s20 + $0xb8] sm:$0xff] }
  0x38   : > { %1225 = vmatprep.mubr.bf16.mxu0 %v1306_v20  ;;  %1241 = vmatprep.mubr.bf16.mxu1 %v1307_v21 }
  0x3f   : > { %1226 = vmatmul.mubr.bf16.gmra.mrb[12].mxu0 %v1308_v22  ;;  %1242 = vmatmul.mubr.bf16.gmra.mrb[12].mxu1 %v1309_v23  ;;  %v884_v23 = vld [vmem:[%s1429_s20 + $0x28] sm:$0xff] }
  0xfa   : > { %v1215_v24 = vpop.f32.mrb[0].mxu0  ;;  %v1231_v26 = vpop.f32.mrb[0].mxu1 }
  0xfb   : > { %v614_v27 = vpop.f32.mrb[1].mxu0  ;;  %v678_v28 = vpop.f32.mrb[1].mxu1  ;;  %v849_v33 = vadd.f32 %v1215_v24, %v1434_v25  ;;  %v865_v34 = vadd.f32 %v1231_v26, %v1434_v25  ;;  %v900_v24 = vld [vmem:[%s1429_s20 + $0xa8] sm:$0xff] }
  0xfc   : > { %v1216_v31 = vpop.f32.mrb[2].mxu0  ;;  %v1232_v32 = vpop.f32.mrb[2].mxu1  ;;  %v847_v39 = vadd.f32 %v1434_v25, %v614_v27  ;;  %v863_v40 = vadd.f32 %v1434_v25, %v678_v28 }
  0xfd   : > { %v617_v37 = vpop.f32.mrb[3].mxu0  ;;  %v681_v38 = vpop.f32.mrb[3].mxu1  ;;  %v913_v43 = vadd.f32 %v881_v29, %v849_v33  ;;  %v929_v44 = vadd.f32 %v897_v30, %v865_v34  ;;  %v850_v45 = vadd.f32 %v1216_v31, %v1434_v25  ;;  %v866_v46 = vadd.f32 %v1232_v32, %v1434_v25 }
  0xfe   : > { %v911_v49 = vadd.f32 %v879_v35, %v847_v39  ;;  %v927_v50 = vadd.f32 %v895_v36, %v863_v40  ;;  %v848_v51 = vadd.f32 %v1434_v25, %v617_v37  ;;  %v864_v52 = vadd.f32 %v1434_v25, %v681_v38 }
  0xff   : > { %v945_v53 = vmax.f32 %v913_v43, 0.0  ;;  %v961_v54 = vmax.f32 %v929_v44, 0.0  ;;  %v914_v55 = vadd.f32 %v882_v41, %v850_v45  ;;  %v930_v56 = vadd.f32 %v898_v42, %v866_v46  ;;  %v889_v46 = vld [vmem:[%s1429_s20 + $0x50] sm:$0xff] }
 0x100   : > { %v943_v57 = vmax.f32 %v911_v49, 0.0  ;;  %v959_v58 = vmax.f32 %v927_v50, 0.0  ;;  %v912_v59 = vadd.f32 %v880_v47, %v848_v51  ;;  %v928_v60 = vadd.f32 %v896_v48, %v864_v52  ;;  %v905_v47 = vld [vmem:[%s1429_s20 + $0xd0] sm:$0xff]  ;;  %v887_v52 = vld [vmem:[%s1429_s20 + $0x40] sm:$0xff] }
 0x101   : > { %977 = vst [vmem:[%s1453_s25 + $0x10] sm:$0xff] %v945_v53  ;;  %993 = vst [vmem:[%s1453_s25 + $0x90] sm:$0xff] %v961_v54  ;;  %v946_v63 = vmax.f32 %v914_v55, 0.0  ;;  %v962_v0 = vmax.f32 %v930_v56, 0.0  ;;  %v903_v53 = vld [vmem:[%s1429_s20 + $0xc0] sm:$0xff] }
 0x102   : > { %v1219_v61 = vpop.f32.mrb[4].mxu0  ;;  %v1235_v62 = vpop.f32.mrb[4].mxu1  ;;  %975 = vst [vmem:[%s1453_s25] sm:$0xff] %v943_v57  ;;  %991 = vst [vmem:[%s1453_s25 + $0x80] sm:$0xff] %v959_v58  ;;  %v944_v3 = vmax.f32 %v912_v59, 0.0  ;;  %v960_v4 = vmax.f32 %v928_v60, 0.0  ;;  %v890_v58 = vld [vmem:[%s1429_s20 + $0x58] sm:$0xff] }
 0x103   : > { %v630_v1 = vpop.f32.mrb[5].mxu0  ;;  %v694_v2 = vpop.f32.mrb[5].mxu1  ;;  %978 = vst [vmem:[%s1453_s25 + $0x18] sm:$0xff] %v946_v63  ;;  %994 = vst [vmem:[%s1453_s25 + $0x98] sm:$0xff] %v962_v0  ;;  %v853_v9 = vadd.f32 %v1219_v61, %v1434_v25  ;;  %v869_v10 = vadd.f32 %v1235_v62, %v1434_v25  ;;  %v906_v59 = vld [vmem:[%s1429_s20 + $0xd8] sm:$0xff]  ;;  %v888_v0 = vld [vmem:[%s1429_s20 + $0x48] sm:$0xff] }
 0x104   : > { %v1220_v7 = vpop.f32.mrb[6].mxu0  ;;  %v1236_v8 = vpop.f32.mrb[6].mxu1  ;;  %976 = vst [vmem:[%s1453_s25 + $0x8] sm:$0xff] %v944_v3  ;;  %992 = vst [vmem:[%s1453_s25 + $0x88] sm:$0xff] %v960_v4  ;;  %v851_v15 = vadd.f32 %v1434_v25, %v630_v1  ;;  %v867_v16 = vadd.f32 %v1434_v25, %v694_v2  ;;  %v904_v1 = vld [vmem:[%s1429_s20 + $0xc8] sm:$0xff] }
 0x105   : > { %v633_v13 = vpop.f32.mrb[7].mxu0  ;;  %v697_v14 = vpop.f32.mrb[7].mxu1  ;;  %v917_v19 = vadd.f32 %v885_v5, %v853_v9  ;;  %v933_v20 = vadd.f32 %v901_v6, %v869_v10  ;;  %v854_v21 = vadd.f32 %v1220_v7, %v1434_v25  ;;  %v870_v22 = vadd.f32 %v1236_v8, %v1434_v25 }
 0x106   : > { %v915_v26 = vadd.f32 %v883_v11, %v851_v15  ;;  %v931_v27 = vadd.f32 %v899_v12, %v867_v16  ;;  %v852_v28 = vadd.f32 %v1434_v25, %v633_v13  ;;  %v868_v29 = vadd.f32 %v1434_v25, %v697_v14 }
 0x107   : > { %v949_v30 = vmax.f32 %v917_v19, 0.0  ;;  %v965_v31 = vmax.f32 %v933_v20, 0.0  ;;  %v918_v32 = vadd.f32 %v886_v17, %v854_v21  ;;  %v934_v33 = vadd.f32 %v902_v18, %v870_v22  ;;  %v893_v22 = vld [vmem:[%s1429_s20 + $0x70] sm:$0xff] }
 0x108   : > { %v947_v34 = vmax.f32 %v915_v26, 0.0  ;;  %v963_v35 = vmax.f32 %v931_v27, 0.0  ;;  %v916_v36 = vadd.f32 %v884_v23, %v852_v28  ;;  %v932_v37 = vadd.f32 %v900_v24, %v868_v29  ;;  %v909_v23 = vld [vmem:[%s1429_s20 + $0xf0] sm:$0xff]  ;;  %v891_v29 = vld [vmem:[%s1429_s20 + $0x60] sm:$0xff] }
 0x109   : > { %981 = vst [vmem:[%s1453_s25 + $0x30] sm:$0xff] %v949_v30  ;;  %997 = vst [vmem:[%s1453_s25 + $0xb0] sm:$0xff] %v965_v31  ;;  %v950_v40 = vmax.f32 %v918_v32, 0.0  ;;  %v966_v41 = vmax.f32 %v934_v33, 0.0  ;;  %v907_v30 = vld [vmem:[%s1429_s20 + $0xe0] sm:$0xff] }
 0x10a   : > { %v1223_v38 = vpop.f32.mrb[8].mxu0  ;;  %v1239_v39 = vpop.f32.mrb[8].mxu1  ;;  %979 = vst [vmem:[%s1453_s25 + $0x20] sm:$0xff] %v947_v34  ;;  %995 = vst [vmem:[%s1453_s25 + $0xa0] sm:$0xff] %v963_v35  ;;  %v948_v44 = vmax.f32 %v916_v36, 0.0  ;;  %v964_v45 = vmax.f32 %v932_v37, 0.0 }
 0x10b   : > { %v646_v42 = vpop.f32.mrb[9].mxu0  ;;  %v710_v43 = vpop.f32.mrb[9].mxu1  ;;  %982 = vst [vmem:[%s1453_s25 + $0x38] sm:$0xff] %v950_v40  ;;  %998 = vst [vmem:[%s1453_s25 + $0xb8] sm:$0xff] %v966_v41  ;;  %v857_v50 = vadd.f32 %v1223_v38, %v1434_v25  ;;  %v873_v51 = vadd.f32 %v1239_v39, %v1434_v25  ;;  %v894_v35 = vld [vmem:[%s1429_s20 + $0x78] sm:$0xff]  ;;  %v892_v41 = vld [vmem:[%s1429_s20 + $0x68] sm:$0xff] }
 0x10c   : > { %v1224_v48 = vpop.f32.mrb[10].mxu0  ;;  %v1240_v49 = vpop.f32.mrb[10].mxu1  ;;  %980 = vst [vmem:[%s1453_s25 + $0x28] sm:$0xff] %v948_v44  ;;  %996 = vst [vmem:[%s1453_s25 + $0xa8] sm:$0xff] %v964_v45  ;;  %v855_v56 = vadd.f32 %v1434_v25, %v646_v42  ;;  %v871_v57 = vadd.f32 %v1434_v25, %v710_v43  ;;  %v910_v36 = vld [vmem:[%s1429_s20 + $0xf8] sm:$0xff]  ;;  %v908_v42 = vld [vmem:[%s1429_s20 + $0xe8] sm:$0xff] }
 0x10d   : > { %v649_v54 = vpop.f32.mrb[11].mxu0  ;;  %v713_v55 = vpop.f32.mrb[11].mxu1  ;;  %v921_v60 = vadd.f32 %v889_v46, %v857_v50  ;;  %v937_v61 = vadd.f32 %v905_v47, %v873_v51  ;;  %v858_v62 = vadd.f32 %v1224_v48, %v1434_v25  ;;  %v874_v63 = vadd.f32 %v1240_v49, %v1434_v25 }
 0x10e   : > { %v919_v2 = vadd.f32 %v887_v52, %v855_v56  ;;  %v935_v3 = vadd.f32 %v903_v53, %v871_v57  ;;  %v856_v4 = vadd.f32 %v1434_v25, %v649_v54  ;;  %v872_v5 = vadd.f32 %v1434_v25, %v713_v55 }
 0x10f   : > { %v953_v6 = vmax.f32 %v921_v60, 0.0  ;;  %v969_v7 = vmax.f32 %v937_v61, 0.0  ;;  %v922_v8 = vadd.f32 %v890_v58, %v858_v62  ;;  %v938_v9 = vadd.f32 %v906_v59, %v874_v63 }
 0x110   : > { %v951_v10 = vmax.f32 %v919_v2, 0.0  ;;  %v967_v11 = vmax.f32 %v935_v3, 0.0  ;;  %v920_v12 = vadd.f32 %v888_v0, %v856_v4  ;;  %v936_v13 = vadd.f32 %v904_v1, %v872_v5 }
 0x111   : > { %985 = vst [vmem:[%s1453_s25 + $0x50] sm:$0xff] %v953_v6  ;;  %1001 = vst [vmem:[%s1453_s25 + $0xd0] sm:$0xff] %v969_v7  ;;  %v954_v16 = vmax.f32 %v922_v8, 0.0  ;;  %v970_v17 = vmax.f32 %v938_v9, 0.0 }
 0x112   : > { %v1227_v14 = vpop.f32.mrb[12].mxu0  ;;  %v1243_v15 = vpop.f32.mrb[12].mxu1  ;;  %983 = vst [vmem:[%s1453_s25 + $0x40] sm:$0xff] %v951_v10  ;;  %999 = vst [vmem:[%s1453_s25 + $0xc0] sm:$0xff] %v967_v11  ;;  %v952_v20 = vmax.f32 %v920_v12, 0.0  ;;  %v968_v21 = vmax.f32 %v936_v13, 0.0 }
 0x113   : > { %v662_v18 = vpop.f32.mrb[13].mxu0  ;;  %v726_v19 = vpop.f32.mrb[13].mxu1  ;;  %986 = vst [vmem:[%s1453_s25 + $0x58] sm:$0xff] %v954_v16  ;;  %1002 = vst [vmem:[%s1453_s25 + $0xd8] sm:$0xff] %v970_v17  ;;  %v861_v27 = vadd.f32 %v1227_v14, %v1434_v25  ;;  %v877_v28 = vadd.f32 %v1243_v15, %v1434_v25 }
 0x114   : > { %v1228_v24 = vpop.f32.mrb[14].mxu0  ;;  %v1244_v26 = vpop.f32.mrb[14].mxu1  ;;  %984 = vst [vmem:[%s1453_s25 + $0x48] sm:$0xff] %v952_v20  ;;  %1000 = vst [vmem:[%s1453_s25 + $0xc8] sm:$0xff] %v968_v21  ;;  %v859_v33 = vadd.f32 %v1434_v25, %v662_v18  ;;  %v875_v34 = vadd.f32 %v1434_v25, %v726_v19 }
 0x115   : > { %v665_v31 = vpop.f32.mrb[15].mxu0  ;;  %v729_v32 = vpop.f32.mrb[15].mxu1  ;;  %v925_v37 = vadd.f32 %v893_v22, %v861_v27  ;;  %v941_v38 = vadd.f32 %v909_v23, %v877_v28  ;;  %v862_v39 = vadd.f32 %v1228_v24, %v1434_v25  ;;  %v878_v40 = vadd.f32 %v1244_v26, %v1434_v25 }
 0x116   : > { %v923_v43 = vadd.f32 %v891_v29, %v859_v33  ;;  %v939_v44 = vadd.f32 %v907_v30, %v875_v34  ;;  %v860_v45 = vadd.f32 %v1434_v25, %v665_v31  ;;  %v876_v46 = vadd.f32 %v1434_v25, %v729_v32 }
 0x117   : > { %v957_v47 = vmax.f32 %v925_v37, 0.0  ;;  %v973_v48 = vmax.f32 %v941_v38, 0.0  ;;  %v926_v49 = vadd.f32 %v894_v35, %v862_v39  ;;  %v942_v50 = vadd.f32 %v910_v36, %v878_v40 }
 0x118   : > { %v955_v51 = vmax.f32 %v923_v43, 0.0  ;;  %v971_v52 = vmax.f32 %v939_v44, 0.0  ;;  %v924_v53 = vadd.f32 %v892_v41, %v860_v45  ;;  %v940_v54 = vadd.f32 %v908_v42, %v876_v46 }
 0x119   : > { %989 = vst [vmem:[%s1453_s25 + $0x70] sm:$0xff] %v957_v47  ;;  %1005 = vst [vmem:[%s1453_s25 + $0xf0] sm:$0xff] %v973_v48  ;;  %v958_v55 = vmax.f32 %v926_v49, 0.0  ;;  %v974_v56 = vmax.f32 %v942_v50, 0.0 }
 0x11a   : > { %987 = vst [vmem:[%s1453_s25 + $0x60] sm:$0xff] %v955_v51  ;;  %1003 = vst [vmem:[%s1453_s25 + $0xe0] sm:$0xff] %v971_v52  ;;  %v956_v57 = vmax.f32 %v924_v53, 0.0  ;;  %v972_v25 = vmax.f32 %v940_v54, 0.0 }
 0x11b   : > { %990 = vst [vmem:[%s1453_s25 + $0x78] sm:$0xff] %v958_v55  ;;  %1006 = vst [vmem:[%s1453_s25 + $0xf8] sm:$0xff] %v974_v56 }
 0x11c   : > { %988 = vst [vmem:[%s1453_s25 + $0x68] sm:$0xff] %v956_v57  ;;  %1004 = vst [vmem:[%s1453_s25 + $0xe8] sm:$0xff] %v972_v25 }
 0x11d PF: > { %s14_s17 = sadd.s32 1, %s1332_s17   ;;  %s1551_s15 = smov %s1328_s16 }
 0x11e   : > { %p11_p5 = scmp.ge.s32.totalorder %s14_s17, 4   ;;  %s1552_s16 = smov %s1554_s18 }
 0x120   :  { %13 = sbr.rel (!%p11_p5) target bundleno = 2 (0x2), region = 83 }

</bundles_post_ra>
